<compile_context>
chip_gen: v7x
topology: tpu7x:2x2x1
jax: 0.10.0
libtpu: 0.0.40
codegen_flags: <defaults>
</compile_context>

<pallas_src>
import functools
import math

import jax
import jax.numpy as jnp
from jax.experimental import pallas as pl
from jax.experimental.pallas import tpu as pltpu


# Leaves >= 25% headroom under v7x's 64 MiB physical VMEM; well below v5e/v6e's 128 MiB.
_VMEM_LIMIT = 48 * 1024 * 1024


def _round_up(x, m):
    return ((x + m - 1) // m) * m


def _choose_tile(dim, preferred, align):
    """Largest multiple of `align` that divides `dim` and is <= `preferred`.
    If none exists, return the *smallest* aligned divisor > preferred (never silently a
    giant full-dim block that could blow VMEM on v7x)."""
    if dim <= preferred:
        return dim
    best = None
    for c in range(align, preferred + 1, align):
        if dim % c == 0:
            best = c
    if best is not None:
        return best
    for c in range(preferred + align, dim, align):
        if dim % c == 0:
            return c
    return dim


def _pick_head_group(num_heads, head_dim, max_width=512):
    """Heads processed per attention grid step: amortizes per-step overhead and makes the
    grouped Wo contraction depth (kh*head_dim) approach the MXU depth."""
    kh = 1
    for c in range(1, num_heads + 1):
        if num_heads % c == 0 and c * head_dim <= max_width:
            kh = c
    return kh


# ---------------------------------------------------------------------------
# 1) Tiled linear (+ bias): fused QKV projection.
# ---------------------------------------------------------------------------
def _linear_kernel(x_ref, w_ref, b_ref, out_ref):
    acc = jnp.dot(x_ref[...], w_ref[...], preferred_element_type=jnp.float32)
    out_ref[...] = (acc + b_ref[...].astype(jnp.float32)).astype(out_ref.dtype)


def _linear(x, w, b, *, tm_pref=1024, tn_pref=512):
    M, K = x.shape
    N = w.shape[1]
    tm = min(tm_pref, _round_up(M, 8))
    Mp = _round_up(M, tm)
    xp = jnp.pad(x, ((0, Mp - M), (0, 0))) if Mp != M else x
    tn = _choose_tile(N, tn_pref, 128)
    itemsize = jnp.dtype(x.dtype).itemsize
    out = pl.pallas_call(
        _linear_kernel,
        out_shape=jax.ShapeDtypeStruct((Mp, N), x.dtype),
        grid_spec=pltpu.PrefetchScalarGridSpec(
            num_scalar_prefetch=0,
            grid=(Mp // tm, N // tn),
            in_specs=[
                pl.BlockSpec((tm, K), lambda m, n: (m, 0)),   # x row tile (resident over n)
                pl.BlockSpec((K, tn), lambda m, n: (0, n)),   # weight column tile
                pl.BlockSpec((1, tn), lambda m, n: (0, n)),   # bias tile
            ],
            out_specs=pl.BlockSpec((tm, tn), lambda m, n: (m, n)),
        ),
        compiler_params=pltpu.CompilerParams(
            dimension_semantics=("parallel", "parallel"),
            vmem_limit_bytes=_VMEM_LIMIT),
        cost_estimate=pl.CostEstimate(
            flops=2 * Mp * K * N,
            transcendentals=0,
            # x once, weights re-streamed per row tile, output once.
            bytes_accessed=itemsize * (Mp * K + (Mp // tm) * K * N + Mp * N + N)),
    )(xp, w, b.reshape(1, N))
    return out[:M] if Mp != M else out


# ---------------------------------------------------------------------------
# 2) Attention core + output projection + Add&LayerNorm
#    (BertSelfAttention + BertSelfOutput fused).
# ---------------------------------------------------------------------------
def _attn_kernel(q_ref, k_ref, v_ref, mask_ref, x_ref, wo_ref, bo_ref, gam_ref, beta_ref,
                 out_ref, acc_ref, *, kh, scale, eps):
    g = pl.program_id(1)

    @pl.when(g == 0)
    def _():
        acc_ref[...] = jnp.zeros_like(acc_ref)

    add_mask = mask_ref[0].astype(jnp.float32)              # (1, S) broadcast over queries

    ctx_cols = []
    for j in range(kh):                                      # static unroll over group heads
        q = q_ref[0, j] * scale                              # fold 1/sqrt(hd) into q
        k = k_ref[0, j]
        v = v_ref[0, j]
        # q @ k^T without an explicit transpose of k (contract last dims directly).
        scores = jax.lax.dot_general(
            q, k, dimension_numbers=(((1,), (1,)), ((), ())),
            preferred_element_type=jnp.float32)
        scores = scores + add_mask
        smax = jnp.max(scores, axis=-1, keepdims=True)
        p = jnp.exp(scores - smax)                           # unnormalized probs (f32)
        denom = jnp.sum(p, axis=-1, keepdims=True)
        ctx = jnp.dot(p.astype(v.dtype), v, preferred_element_type=jnp.float32)
        # Deferred softmax normalization: scale the (S, hd) context, not the (S, S) probs.
        ctx_cols.append(ctx * pl.reciprocal(denom, approx=True))
    ctx_g = jnp.concatenate(ctx_cols, axis=-1)               # (S, kh*hd) f32

    # One full-depth (K = kh*hd) matmul against the matching Wo row block.
    gw = ctx_g.shape[-1]
    if gw == wo_ref.shape[0]:
        wo_g = wo_ref[...]
    else:
        row0 = pl.multiple_of(g * gw, 8)
        wo_g = wo_ref[pl.ds(row0, gw), :]
    acc_ref[...] += jnp.dot(ctx_g.astype(wo_g.dtype), wo_g,
                            preferred_element_type=jnp.float32)

    @pl.when(g == pl.num_programs(1) - 1)
    def _():
        y = acc_ref[...] + bo_ref[...].astype(jnp.float32)
        y = y + x_ref[0].astype(jnp.float32)                 # residual (dropout = identity)
        mean = jnp.mean(y, axis=-1, keepdims=True)
        var = jnp.mean((y - mean) * (y - mean), axis=-1, keepdims=True)
        y = (y - mean) * jax.lax.rsqrt(var + eps)
        y = y * gam_ref[...].astype(jnp.float32) + beta_ref[...].astype(jnp.float32)
        out_ref[0] = y.astype(out_ref.dtype)


def _attention_block(q, k, v, add_mask, x, wo, bo, gamma, beta, *, eps):
    B, nh, S, hd = q.shape
    H = x.shape[-1]
    kh = _pick_head_group(nh, hd)
    ngroups = nh // kh
    assert (kh * hd) % 8 == 0 or ngroups == 1, "grouped head width must be 8-aligned"
    scale = 1.0 / math.sqrt(hd)
    itemsize = jnp.dtype(x.dtype).itemsize
    kernel = functools.partial(_attn_kernel, kh=kh, scale=scale, eps=eps)
    # TODO(synk): for v7x with tiny batch, add a query-row tile axis marked "parallel" so
    # both TensorCores get work; here the only parallel axis is the batch.
    return pl.pallas_call(
        kernel,
        out_shape=jax.ShapeDtypeStruct((B, S, H), x.dtype),
        grid_spec=pltpu.PrefetchScalarGridSpec(
            num_scalar_prefetch=0,
            grid=(B, ngroups),
            in_specs=[
                pl.BlockSpec((1, kh, S, hd), lambda b, g: (b, g, 0, 0)),   # q group
                pl.BlockSpec((1, kh, S, hd), lambda b, g: (b, g, 0, 0)),   # k group
                pl.BlockSpec((1, kh, S, hd), lambda b, g: (b, g, 0, 0)),   # v group
                pl.BlockSpec((1, 1, S), lambda b, g: (b, 0, 0)),           # additive mask
                pl.BlockSpec((1, S, H), lambda b, g: (b, 0, 0)),           # residual input
                pl.BlockSpec((H, H), lambda b, g: (0, 0)),                 # Wo, fully resident
                pl.BlockSpec((1, H), lambda b, g: (0, 0)),                 # bo
                pl.BlockSpec((1, H), lambda b, g: (0, 0)),                 # LN gamma
                pl.BlockSpec((1, H), lambda b, g: (0, 0)),                 # LN beta
            ],
            out_specs=pl.BlockSpec((1, S, H), lambda b, g: (b, 0, 0)),
            scratch_shapes=[pltpu.VMEM((S, H), jnp.float32)],
        ),
        compiler_params=pltpu.CompilerParams(
            dimension_semantics=("parallel", "arbitrary"),
            vmem_limit_bytes=_VMEM_LIMIT),
        cost_estimate=pl.CostEstimate(
            flops=B * (4 * nh * S * S * hd + 2 * S * H * H),
            transcendentals=B * nh * S * S,
            bytes_accessed=itemsize * (3 * B * nh * S * hd + 2 * B * S * H + H * H + 3 * H)
                           + 4 * B * S),
    )(q, k, v, add_mask.reshape(B, 1, S).astype(jnp.float32),
      x, wo, bo.reshape(1, H), gamma.reshape(1, H), beta.reshape(1, H))


# ---------------------------------------------------------------------------
# 3) Feed-forward: BertIntermediate (GELU) + BertOutput (dense + Add&LayerNorm), fused.
# ---------------------------------------------------------------------------
def _ffn_kernel(x_ref, w1_ref, b1_ref, w2_ref, b2_ref, gam_ref, beta_ref,
                out_ref, acc_ref, *, eps):
    i = pl.program_id(1)

    @pl.when(i == 0)
    def _():
        acc_ref[...] = jnp.zeros_like(acc_ref)

    h = jnp.dot(x_ref[...], w1_ref[...],
                preferred_element_type=jnp.float32) + b1_ref[...].astype(jnp.float32)
    # exact (erf) GELU — HF ACT2FN["gelu"]
    h = 0.5 * h * (1.0 + jax.lax.erf(h * 0.7071067811865476))
    acc_ref[...] += jnp.dot(h.astype(w2_ref.dtype), w2_ref[...],
                            preferred_element_type=jnp.float32)

    @pl.when(i == pl.num_programs(1) - 1)
    def _():
        y = acc_ref[...] + b2_ref[...].astype(jnp.float32)
        y = y + x_ref[...].astype(jnp.float32)               # residual (dropout = identity)
        mean = jnp.mean(y, axis=-1, keepdims=True)
        var = jnp.mean((y - mean) * (y - mean), axis=-1, keepdims=True)
        y = (y - mean) * jax.lax.rsqrt(var + eps)
        y = y * gam_ref[...].astype(jnp.float32) + beta_ref[...].astype(jnp.float32)
        out_ref[...] = y.astype(out_ref.dtype)


def _ffn_block(x2d, w1, b1, w2, b2, gamma, beta, *, eps, tm_pref=1024, ti_pref=512):
    M, H = x2d.shape
    I = w1.shape[1]
    tm = min(tm_pref, _round_up(M, 8))
    Mp = _round_up(M, tm)
    xp = jnp.pad(x2d, ((0, Mp - M), (0, 0))) if Mp != M else x2d
    ti = _choose_tile(I, ti_pref, 128)
    itemsize = jnp.dtype(x2d.dtype).itemsize
    kernel = functools.partial(_ffn_kernel, eps=eps)
    out = pl.pallas_call(
        kernel,
        out_shape=jax.ShapeDtypeStruct((Mp, H), x2d.dtype),
        grid_spec=pltpu.PrefetchScalarGridSpec(
            num_scalar_prefetch=0,
            grid=(Mp // tm, I // ti),
            in_specs=[
                pl.BlockSpec((tm, H), lambda m, i: (m, 0)),   # x (also the residual)
                pl.BlockSpec((H, ti), lambda m, i: (0, i)),   # W1 column tile
                pl.BlockSpec((1, ti), lambda m, i: (0, i)),   # b1 tile
                pl.BlockSpec((ti, H), lambda m, i: (i, 0)),   # W2 row tile
                pl.BlockSpec((1, H), lambda m, i: (0, 0)),    # b2
                pl.BlockSpec((1, H), lambda m, i: (0, 0)),    # LN gamma
                pl.BlockSpec((1, H), lambda m, i: (0, 0)),    # LN beta
            ],
            out_specs=pl.BlockSpec((tm, H), lambda m, i: (m, 0)),
            scratch_shapes=[pltpu.VMEM((tm, H), jnp.float32)],
        ),
        compiler_params=pltpu.CompilerParams(
            dimension_semantics=("parallel", "arbitrary"),
            vmem_limit_bytes=_VMEM_LIMIT),
        cost_estimate=pl.CostEstimate(
            flops=4 * Mp * H * I,
            transcendentals=Mp * I,
            # x + output once, W1/W2 re-streamed once per row tile.
            bytes_accessed=itemsize * (2 * Mp * H + (Mp // tm) * 2 * H * I + I + 3 * H)),
    )(xp, w1, b1.reshape(1, I), w2, b2.reshape(1, H),
      gamma.reshape(1, H), beta.reshape(1, H))
    return out[:M] if Mp != M else out


# ---------------------------------------------------------------------------
# BertLayer / BertEncoder
# ---------------------------------------------------------------------------
def prepare_layer_params(p):
    """Host-side, once per model load: pre-concatenate the fused QKV weight/bias so the
    concat is not re-executed (and re-written to HBM) on every forward call."""
    q = dict(p)
    q["w_qkv"] = jnp.concatenate([p["wq"], p["wk"], p["wv"]], axis=1)   # (H, 3H)
    q["b_qkv"] = jnp.concatenate([p["bq"], p["bk"], p["bv"]], axis=0)   # (3H,)
    for name in ("wq", "wk", "wv", "bq", "bk", "bv"):
        q.pop(name)
    return q


def bert_layer(x, add_mask, p, *, num_heads, eps):
    B, S, H = x.shape
    assert H % num_heads == 0
    hd = H // num_heads
    M = B * S
    x2d = x.reshape(M, H)

    # 1) fused QKV projection (one MXU-friendly matmul instead of three)
    qkv = _linear(x2d, p["w_qkv"], p["b_qkv"])                         # (M, 3H)

    # TODO(synk): with head_dim >= 128 the per-head slices could be read straight from the
    # (B, S, 3H) layout via BlockSpec column indexing; for head_dim < 128 we keep one XLA
    # transpose to the head-separated layout (lane-dim blocks must be 128-aligned).
    qkvh = qkv.reshape(B, S, 3, num_heads, hd).transpose(2, 0, 3, 1, 4)  # (3,B,nh,S,hd)
    q, k, v = qkvh[0], qkvh[1], qkvh[2]

    # 2) attention core + output projection + Add&LayerNorm
    attn_out = _attention_block(q, k, v, add_mask, x, p["wo"], p["bo"],
                                p["ln1_g"], p["ln1_b"], eps=eps)

    # 3) intermediate GELU + output + Add&LayerNorm
    y2d = _ffn_block(attn_out.reshape(M, H), p["w1"], p["b1"],
                     p["w2"], p["b2"], p["ln2_g"], p["ln2_b"], eps=eps)
    return y2d.reshape(B, S, H)


def bert_encoder(hidden_states, attention_mask, layer_params, *, num_heads, eps=1e-12):
    """hidden_states: (B, S, H); attention_mask: additive mask (B, S) (0 keep, -1e9 masked)."""
    # TODO(synk): training-mode dropout, relative_key(_query) position embeddings, full
    # (B,1,S,S) extended masks, and cross-attention / past_key_value / head_mask branches
    # are not implemented (inference defaults).
    x = hidden_states
    for p in layer_params:
        x = bert_layer(x, attention_mask, p, num_heads=num_heads, eps=eps)
    return x


# ---------------------------------------------------------------------------
# Pure-JAX reference
# ---------------------------------------------------------------------------
def _layernorm_ref(x, g, b, eps):
    m = jnp.mean(x, axis=-1, keepdims=True)
    v = jnp.mean((x - m) ** 2, axis=-1, keepdims=True)
    return (x - m) * jax.lax.rsqrt(v + eps) * g + b


def _reference_encoder(x, attention_mask, layer_params, *, num_heads, eps=1e-12):
    HP = jax.lax.Precision.HIGHEST
    B, S, H = x.shape
    hd = H // num_heads
    add_mask = attention_mask[:, None, None, :].astype(jnp.float32)
    x = x.astype(jnp.float32)
    for p in layer_params:
        q = jnp.dot(x, p["wq"], precision=HP) + p["bq"]
        k = jnp.dot(x, p["wk"], precision=HP) + p["bk"]
        v = jnp.dot(x, p["wv"], precision=HP) + p["bv"]

        def heads(t):
            return t.reshape(B, S, num_heads, hd).transpose(0, 2, 1, 3)

        qh, kh, vh = heads(q), heads(k), heads(v)
        scores = jnp.einsum("bhqd,bhkd->bhqk", qh, kh, precision=HP) / math.sqrt(hd)
        scores = scores + add_mask
        probs = jax.nn.softmax(scores, axis=-1)
        ctx = jnp.einsum("bhqk,bhkd->bhqd", probs, vh, precision=HP)
        ctx = ctx.transpose(0, 2, 1, 3).reshape(B, S, H)
        a = jnp.dot(ctx, p["wo"], precision=HP) + p["bo"] + x
        a = _layernorm_ref(a, p["ln1_g"], p["ln1_b"], eps)
        h = jnp.dot(a, p["w1"], precision=HP) + p["b1"]
        h = 0.5 * h * (1.0 + jax.lax.erf(h * 0.7071067811865476))
        y = jnp.dot(h, p["w2"], precision=HP) + p["b2"] + a
        x = _layernorm_ref(y, p["ln2_g"], p["ln2_b"], eps)
    return x


if __name__ == "__main__":
    # Small BERT-like config: hidden=32, 4 heads, intermediate=128, 2 layers, batch=2, seq=8.
    B, S, H, NH, I, L = 2, 8, 32, 4, 128, 2
    key = jax.random.PRNGKey(0)
    keys = jax.random.split(key, L + 1)

    def make_layer(k):
        ks = jax.random.split(k, 16)
        w = lambda kk, shape: 0.02 * jax.random.normal(kk, shape, jnp.float32)
        return {
            "wq": w(ks[0], (H, H)), "bq": w(ks[1], (H,)),
            "wk": w(ks[2], (H, H)), "bk": w(ks[3], (H,)),
            "wv": w(ks[4], (H, H)), "bv": w(ks[5], (H,)),
            "wo": w(ks[6], (H, H)), "bo": w(ks[7], (H,)),
            "ln1_g": 1.0 + 0.1 * jax.random.normal(ks[8], (H,), jnp.float32),
            "ln1_b": 0.1 * jax.random.normal(ks[9], (H,), jnp.float32),
            "w1": w(ks[10], (H, I)), "b1": w(ks[11], (I,)),
            "w2": w(ks[12], (I, H)), "b2": w(ks[13], (H,)),
            "ln2_g": 1.0 + 0.1 * jax.random.normal(ks[14], (H,), jnp.float32),
            "ln2_b": 0.1 * jax.random.normal(ks[15], (H,), jnp.float32),
        }

    raw_layers = [make_layer(keys[i]) for i in range(L)]
    layers = [prepare_layer_params(p) for p in raw_layers]     # load-time QKV fusion
    hidden_states = jax.random.normal(keys[L], (B, S, H), jnp.float32)
    # Additive attention mask (HF "extended" mask): 0 = attend, large negative = masked.
    attention_mask = jnp.zeros((B, S), jnp.float32).at[1, S - 2:].set(-1e9)

    encoder = jax.jit(functools.partial(bert_encoder, num_heads=NH))
    out = jax.block_until_ready(encoder(hidden_states, attention_mask, layers))

    ref = _reference_encoder(hidden_states, attention_mask, raw_layers, num_heads=NH)
    assert out.shape == (B, S, H)
    # Slightly relaxed tolerance: the softmax normalization uses pl.reciprocal(approx=True).
    assert jnp.allclose(out, ref.astype(out.dtype), atol=5e-3, rtol=5e-3), "mismatch vs reference"

    print("KERNEL_OK")
</pallas_src>

<mosaic_0001>
module attributes {stable_mosaic.version = 11 : i64} {
  func.func @_linear_kernel(%arg0: i32, %arg1: i32, %arg2: memref<16x32xf32, #tpu.memory_space<vmem>>, %arg3: memref<32x96xf32, #tpu.memory_space<vmem>>, %arg4: memref<1x96xf32, #tpu.memory_space<vmem>>, %arg5: memref<16x96xf32, #tpu.memory_space<vmem>>) attributes {dimension_semantics = [#tpu.dimension_semantics<parallel>, #tpu.dimension_semantics<parallel>], iteration_bounds = array<i64: 1, 1>, scalar_prefetch = 0 : i64, scratch_operands = 0 : i64, tpu.core_type = #tpu.core_type<tc>, window_params = [{transform_indices = @transform_0, window_bounds = array<i64: 16, 32>}, {transform_indices = @transform_1, window_bounds = array<i64: 32, 96>}, {transform_indices = @transform_2, window_bounds = array<i64: 1, 96>}, {transform_indices = @transform_3, window_bounds = array<i64: 16, 96>}]} {
    %c0 = arith.constant 0 : index
    %c0_0 = arith.constant 0 : index
    %0 = vector.load %arg2[%c0, %c0_0] : memref<16x32xf32, #tpu.memory_space<vmem>>, vector<16x32xf32>
    %c0_1 = arith.constant 0 : index
    %c0_2 = arith.constant 0 : index
    %1 = vector.load %arg3[%c0_1, %c0_2] : memref<32x96xf32, #tpu.memory_space<vmem>>, vector<32x96xf32>
    %cst = arith.constant dense<0.000000e+00> : vector<16x96xf32>
    %2 = tpu.matmul %0, %1, %cst {dimension_numbers = #tpu.dot_dimension_numbers<[1], [0], [0], [1], [0, 0, 1, 1], [], []>} : vector<16x32xf32>, vector<32x96xf32>, vector<16x96xf32> -> vector<16x96xf32>
    %c0_3 = arith.constant 0 : index
    %c0_4 = arith.constant 0 : index
    %3 = vector.load %arg4[%c0_3, %c0_4] : memref<1x96xf32, #tpu.memory_space<vmem>>, vector<1x96xf32>
    %4 = vector.broadcast %3 : vector<1x96xf32> to vector<16x96xf32>
    %5 = arith.addf %2, %4 : vector<16x96xf32>
    %c0_5 = arith.constant 0 : index
    %c0_6 = arith.constant 0 : index
    %6 = vector.load %arg5[%c0_5, %c0_6] : memref<16x96xf32, #tpu.memory_space<vmem>>, vector<16x96xf32>
    tpu.vector_store %arg5[%c0_5, %c0_6], %5 {strides = array<i32>} : memref<16x96xf32, #tpu.memory_space<vmem>>, vector<16x96xf32>,
    return
  }
  func.func @transform_0(%arg0: i32, %arg1: i32) -> (i32, i32) {
    %c0_i32 = arith.constant 0 : i32
    %c0_i32_0 = arith.constant 0 : i32
    return %arg0, %c0_i32 : i32, i32
  }
  func.func @transform_1(%arg0: i32, %arg1: i32) -> (i32, i32) {
    %c0_i32 = arith.constant 0 : i32
    %c0_i32_0 = arith.constant 0 : i32
    return %c0_i32, %arg1 : i32, i32
  }
  func.func @transform_2(%arg0: i32, %arg1: i32) -> (i32, i32) {
    %c0_i32 = arith.constant 0 : i32
    %c0_i32_0 = arith.constant 0 : i32
    return %c0_i32, %arg1 : i32, i32
  }
  func.func @transform_3(%arg0: i32, %arg1: i32) -> (i32, i32) {
    %c0_i32 = arith.constant 0 : i32
    return %arg0, %arg1 : i32, i32
  }
}

module attributes {stable_mosaic.version = 11 : i64} {
  func.func @_ffn_kernel(%arg0: i32, %arg1: i32, %arg2: memref<16x32xf32, #tpu.memory_space<vmem>>, %arg3: memref<32x128xf32, #tpu.memory_space<vmem>>, %arg4: memref<1x128xf32, #tpu.memory_space<vmem>>, %arg5: memref<128x32xf32, #tpu.memory_space<vmem>>, %arg6: memref<1x32xf32, #tpu.memory_space<vmem>>, %arg7: memref<1x32xf32, #tpu.memory_space<vmem>>, %arg8: memref<1x32xf32, #tpu.memory_space<vmem>>, %arg9: memref<16x32xf32, #tpu.memory_space<vmem>>, %arg10: memref<16x32xf32, #tpu.memory_space<vmem>>) attributes {dimension_semantics = [#tpu.dimension_semantics<parallel>, #tpu.dimension_semantics<arbitrary>], iteration_bounds = array<i64: 1, 1>, scalar_prefetch = 0 : i64, scratch_operands = 1 : i64, tpu.core_type = #tpu.core_type<tc>, window_params = [{transform_indices = @transform_0, window_bounds = array<i64: 16, 32>}, {transform_indices = @transform_1, window_bounds = array<i64: 32, 128>}, {transform_indices = @transform_2, window_bounds = array<i64: 1, 128>}, {transform_indices = @transform_3, window_bounds = array<i64: 128, 32>}, {pipeline_mode = #tpu.pipeline_mode<synchronous>, transform_indices = @transform_4, window_bounds = array<i64: 1, 32>}, {pipeline_mode = #tpu.pipeline_mode<synchronous>, transform_indices = @transform_5, window_bounds = array<i64: 1, 32>}, {pipeline_mode = #tpu.pipeline_mode<synchronous>, transform_indices = @transform_6, window_bounds = array<i64: 1, 32>}, {transform_indices = @transform_7, window_bounds = array<i64: 16, 32>}]} {
    %c0_i32 = arith.constant 0 : i32
    %0 = arith.cmpi eq, %arg1, %c0_i32 : i32
    %1 = arith.extui %0 : i1 to i32
    %c0_i32_0 = arith.constant 0 : i32
    %2 = arith.cmpi ne, %1, %c0_i32_0 : i32
    scf.if %2 {
      %cst_18 = arith.constant 0.000000e+00 : f32
      %25 = vector.broadcast %cst_18 : f32 to vector<16x32xf32>
      %c0_19 = arith.constant 0 : index
      %c0_20 = arith.constant 0 : index
      %26 = vector.load %arg10[%c0_19, %c0_20] : memref<16x32xf32, #tpu.memory_space<vmem>>, vector<16x32xf32>
      tpu.vector_store %arg10[%c0_19, %c0_20], %25 {strides = array<i32>} : memref<16x32xf32, #tpu.memory_space<vmem>>, vector<16x32xf32>,
    } else {
    }
    %c0 = arith.constant 0 : index
    %c0_1 = arith.constant 0 : index
    %3 = vector.load %arg2[%c0, %c0_1] : memref<16x32xf32, #tpu.memory_space<vmem>>, vector<16x32xf32>
    %c0_2 = arith.constant 0 : index
    %c0_3 = arith.constant 0 : index
    %4 = vector.load %arg3[%c0_2, %c0_3] : memref<32x128xf32, #tpu.memory_space<vmem>>, vector<32x128xf32>
    %cst = arith.constant dense<0.000000e+00> : vector<16x128xf32>
    %5 = tpu.matmul %3, %4, %cst {dimension_numbers = #tpu.dot_dimension_numbers<[1], [0], [0], [1], [0, 0, 1, 1], [], []>} : vector<16x32xf32>, vector<32x128xf32>, vector<16x128xf32> -> vector<16x128xf32>
    %c0_4 = arith.constant 0 : index
    %c0_5 = arith.constant 0 : index
    %6 = vector.load %arg4[%c0_4, %c0_5] : memref<1x128xf32, #tpu.memory_space<vmem>>, vector<1x128xf32>
    %7 = vector.broadcast %6 : vector<1x128xf32> to vector<16x128xf32>
    %8 = arith.addf %5, %7 : vector<16x128xf32>
    %cst_6 = arith.constant 5.000000e-01 : f32
    %9 = vector.broadcast %cst_6 : f32 to vector<16x128xf32>
    %10 = arith.mulf %9, %8 : vector<16x128xf32>
    %cst_7 = arith.constant 0.707106769 : f32
    %11 = vector.broadcast %cst_7 : f32 to vector<16x128xf32>
    %12 = arith.mulf %8, %11 : vector<16x128xf32>
    %13 = math.erf %12 : vector<16x128xf32>
    %cst_8 = arith.constant 1.000000e+00 : f32
    %14 = vector.broadcast %cst_8 : f32 to vector<16x128xf32>
    %15 = arith.addf %14, %13 : vector<16x128xf32>
    %16 = arith.mulf %10, %15 : vector<16x128xf32>
    %c0_9 = arith.constant 0 : index
    %c0_10 = arith.constant 0 : index
    %17 = vector.load %arg10[%c0_9, %c0_10] : memref<16x32xf32, #tpu.memory_space<vmem>>, vector<16x32xf32>
    %c0_11 = arith.constant 0 : index
    %c0_12 = arith.constant 0 : index
    %18 = vector.load %arg5[%c0_11, %c0_12] : memref<128x32xf32, #tpu.memory_space<vmem>>, vector<128x32xf32>
    %cst_13 = arith.constant dense<0.000000e+00> : vector<16x32xf32>
    %19 = tpu.matmul %16, %18, %cst_13 {dimension_numbers = #tpu.dot_dimension_numbers<[1], [0], [0], [1], [0, 0, 1, 1], [], []>} : vector<16x128xf32>, vector<128x32xf32>, vector<16x32xf32> -> vector<16x32xf32>
    %20 = arith.addf %17, %19 : vector<16x32xf32>
    %c0_14 = arith.constant 0 : index
    %c0_15 = arith.constant 0 : index
    %21 = vector.load %arg10[%c0_14, %c0_15] : memref<16x32xf32, #tpu.memory_space<vmem>>, vector<16x32xf32>
    tpu.vector_store %arg10[%c0_14, %c0_15], %20 {strides = array<i32>} : memref<16x32xf32, #tpu.memory_space<vmem>>, vector<16x32xf32>,
    %c0_i32_16 = arith.constant 0 : i32
    %22 = arith.cmpi eq, %arg1, %c0_i32_16 : i32
    %23 = arith.extui %22 : i1 to i32
    %c0_i32_17 = arith.constant 0 : i32
    %24 = arith.cmpi ne, %23, %c0_i32_17 : i32
    scf.if %24 {
      %c0_18 = arith.constant 0 : index
      %c0_19 = arith.constant 0 : index
      %25 = vector.load %arg10[%c0_18, %c0_19] : memref<16x32xf32, #tpu.memory_space<vmem>>, vector<16x32xf32>
      %c0_20 = arith.constant 0 : index
      %c0_21 = arith.constant 0 : index
      %26 = vector.load %arg6[%c0_20, %c0_21] : memref<1x32xf32, #tpu.memory_space<vmem>>, vector<1x32xf32>
      %27 = vector.broadcast %26 : vector<1x32xf32> to vector<16x32xf32>
      %28 = arith.addf %25, %27 : vector<16x32xf32>
      %c0_22 = arith.constant 0 : index
      %c0_23 = arith.constant 0 : index
      %29 = vector.load %arg2[%c0_22, %c0_23] : memref<16x32xf32, #tpu.memory_space<vmem>>, vector<16x32xf32>
      %30 = arith.addf %28, %29 : vector<16x32xf32>
      %cst_24 = arith.constant dense<0.000000e+00> : vector<16xf32>
      %31 = vector.multi_reduction <add>, %30, %cst_24 [1] : vector<16x32xf32> to vector<16xf32>
      %32 = vector.shape_cast %31 : vector<16xf32> to vector<16x1xf32>
      %cst_25 = arith.constant 3.200000e+01 : f32
      %33 = vector.broadcast %cst_25 : f32 to vector<16x1xf32>
      %34 = arith.divf %32, %33 : vector<16x1xf32>
      %35 = vector.broadcast %34 : vector<16x1xf32> to vector<16x32xf32>
      %36 = arith.subf %30, %35 : vector<16x32xf32>
      %37 = vector.broadcast %34 : vector<16x1xf32> to vector<16x32xf32>
      %38 = arith.subf %30, %37 : vector<16x32xf32>
      %39 = arith.mulf %36, %38 : vector<16x32xf32>
      %cst_26 = arith.constant dense<0.000000e+00> : vector<16xf32>
      %40 = vector.multi_reduction <add>, %39, %cst_26 [1] : vector<16x32xf32> to vector<16xf32>
      %41 = vector.shape_cast %40 : vector<16xf32> to vector<16x1xf32>
      %cst_27 = arith.constant 3.200000e+01 : f32
      %42 = vector.broadcast %cst_27 : f32 to vector<16x1xf32>
      %43 = arith.divf %41, %42 : vector<16x1xf32>
      %44 = vector.broadcast %34 : vector<16x1xf32> to vector<16x32xf32>
      %45 = arith.subf %30, %44 : vector<16x32xf32>
      %cst_28 = arith.constant 9.99999996E-13 : f32
      %46 = vector.broadcast %cst_28 : f32 to vector<16x1xf32>
      %47 = arith.addf %43, %46 : vector<16x1xf32>
      %48 = math.rsqrt %47 : vector<16x1xf32>
      %49 = vector.broadcast %48 : vector<16x1xf32> to vector<16x32xf32>
      %50 = arith.mulf %45, %49 : vector<16x32xf32>
      %c0_29 = arith.constant 0 : index
      %c0_30 = arith.constant 0 : index
      %51 = vector.load %arg7[%c0_29, %c0_30] : memref<1x32xf32, #tpu.memory_space<vmem>>, vector<1x32xf32>
      %52 = vector.broadcast %51 : vector<1x32xf32> to vector<16x32xf32>
      %53 = arith.mulf %50, %52 : vector<16x32xf32>
      %c0_31 = arith.constant 0 : index
      %c0_32 = arith.constant 0 : index
      %54 = vector.load %arg8[%c0_31, %c0_32] : memref<1x32xf32, #tpu.memory_space<vmem>>, vector<1x32xf32>
      %55 = vector.broadcast %54 : vector<1x32xf32> to vector<16x32xf32>
      %56 = arith.addf %53, %55 : vector<16x32xf32>
      %c0_33 = arith.constant 0 : index
      %c0_34 = arith.constant 0 : index
      %57 = vector.load %arg9[%c0_33, %c0_34] : memref<16x32xf32, #tpu.memory_space<vmem>>, vector<16x32xf32>
      tpu.vector_store %arg9[%c0_33, %c0_34], %56 {strides = array<i32>} : memref<16x32xf32, #tpu.memory_space<vmem>>, vector<16x32xf32>,
    } else {
    }
    return
  }
  func.func @transform_0(%arg0: i32, %arg1: i32) -> (i32, i32) {
    %c0_i32 = arith.constant 0 : i32
    %c0_i32_0 = arith.constant 0 : i32
    return %arg0, %c0_i32 : i32, i32
  }
  func.func @transform_1(%arg0: i32, %arg1: i32) -> (i32, i32) {
    %c0_i32 = arith.constant 0 : i32
    %c0_i32_0 = arith.constant 0 : i32
    return %c0_i32, %arg1 : i32, i32
  }
  func.func @transform_2(%arg0: i32, %arg1: i32) -> (i32, i32) {
    %c0_i32 = arith.constant 0 : i32
    %c0_i32_0 = arith.constant 0 : i32
    return %c0_i32, %arg1 : i32, i32
  }
  func.func @transform_3(%arg0: i32, %arg1: i32) -> (i32, i32) {
    %c0_i32 = arith.constant 0 : i32
    %c0_i32_0 = arith.constant 0 : i32
    return %arg1, %c0_i32 : i32, i32
  }
  func.func @transform_4(%arg0: i32, %arg1: i32) -> (i32, i32) {
    %c0_i32 = arith.constant 0 : i32
    %c0_i32_0 = arith.constant 0 : i32
    %c0_i32_1 = arith.constant 0 : i32
    return %c0_i32, %c0_i32_0 : i32, i32
  }
  func.func @transform_5(%arg0: i32, %arg1: i32) -> (i32, i32) {
    %c0_i32 = arith.constant 0 : i32
    %c0_i32_0 = arith.constant 0 : i32
    %c0_i32_1 = arith.constant 0 : i32
    return %c0_i32, %c0_i32_0 : i32, i32
  }
  func.func @transform_6(%arg0: i32, %arg1: i32) -> (i32, i32) {
    %c0_i32 = arith.constant 0 : i32
    %c0_i32_0 = arith.constant 0 : i32
    %c0_i32_1 = arith.constant 0 : i32
    return %c0_i32, %c0_i32_0 : i32, i32
  }
  func.func @transform_7(%arg0: i32, %arg1: i32) -> (i32, i32) {
    %c0_i32 = arith.constant 0 : i32
    %c0_i32_0 = arith.constant 0 : i32
    return %arg0, %c0_i32 : i32, i32
  }
}

module attributes {stable_mosaic.version = 11 : i64} {
  func.func @_ffn_kernel(%arg0: i32, %arg1: i32, %arg2: memref<16x32xf32, #tpu.memory_space<vmem>>, %arg3: memref<32x128xf32, #tpu.memory_space<vmem>>, %arg4: memref<1x128xf32, #tpu.memory_space<vmem>>, %arg5: memref<128x32xf32, #tpu.memory_space<vmem>>, %arg6: memref<1x32xf32, #tpu.memory_space<vmem>>, %arg7: memref<1x32xf32, #tpu.memory_space<vmem>>, %arg8: memref<1x32xf32, #tpu.memory_space<vmem>>, %arg9: memref<16x32xf32, #tpu.memory_space<vmem>>, %arg10: memref<16x32xf32, #tpu.memory_space<vmem>>) attributes {dimension_semantics = [#tpu.dimension_semantics<parallel>, #tpu.dimension_semantics<arbitrary>], iteration_bounds = array<i64: 1, 1>, scalar_prefetch = 0 : i64, scratch_operands = 1 : i64, tpu.core_type = #tpu.core_type<tc>, window_params = [{transform_indices = @transform_0, window_bounds = array<i64: 16, 32>}, {transform_indices = @transform_1, window_bounds = array<i64: 32, 128>}, {transform_indices = @transform_2, window_bounds = array<i64: 1, 128>}, {transform_indices = @transform_3, window_bounds = array<i64: 128, 32>}, {pipeline_mode = #tpu.pipeline_mode<synchronous>, transform_indices = @transform_4, window_bounds = array<i64: 1, 32>}, {pipeline_mode = #tpu.pipeline_mode<synchronous>, transform_indices = @transform_5, window_bounds = array<i64: 1, 32>}, {pipeline_mode = #tpu.pipeline_mode<synchronous>, transform_indices = @transform_6, window_bounds = array<i64: 1, 32>}, {transform_indices = @transform_7, window_bounds = array<i64: 16, 32>}]} {
    %c0_i32 = arith.constant 0 : i32
    %0 = arith.cmpi eq, %arg1, %c0_i32 : i32
    %1 = arith.extui %0 : i1 to i32
    %c0_i32_0 = arith.constant 0 : i32
    %2 = arith.cmpi ne, %1, %c0_i32_0 : i32
    scf.if %2 {
      %cst_18 = arith.constant 0.000000e+00 : f32
      %25 = vector.broadcast %cst_18 : f32 to vector<16x32xf32>
      %c0_19 = arith.constant 0 : index
      %c0_20 = arith.constant 0 : index
      %26 = vector.load %arg10[%c0_19, %c0_20] : memref<16x32xf32, #tpu.memory_space<vmem>>, vector<16x32xf32>
      tpu.vector_store %arg10[%c0_19, %c0_20], %25 {strides = array<i32>} : memref<16x32xf32, #tpu.memory_space<vmem>>, vector<16x32xf32>,
    } else {
    }
    %c0 = arith.constant 0 : index
    %c0_1 = arith.constant 0 : index
    %3 = vector.load %arg2[%c0, %c0_1] : memref<16x32xf32, #tpu.memory_space<vmem>>, vector<16x32xf32>
    %c0_2 = arith.constant 0 : index
    %c0_3 = arith.constant 0 : index
    %4 = vector.load %arg3[%c0_2, %c0_3] : memref<32x128xf32, #tpu.memory_space<vmem>>, vector<32x128xf32>
    %cst = arith.constant dense<0.000000e+00> : vector<16x128xf32>
    %5 = tpu.matmul %3, %4, %cst {dimension_numbers = #tpu.dot_dimension_numbers<[1], [0], [0], [1], [0, 0, 1, 1], [], []>} : vector<16x32xf32>, vector<32x128xf32>, vector<16x128xf32> -> vector<16x128xf32>
    %c0_4 = arith.constant 0 : index
    %c0_5 = arith.constant 0 : index
    %6 = vector.load %arg4[%c0_4, %c0_5] : memref<1x128xf32, #tpu.memory_space<vmem>>, vector<1x128xf32>
    %7 = vector.broadcast %6 : vector<1x128xf32> to vector<16x128xf32>
    %8 = arith.addf %5, %7 : vector<16x128xf32>
    %cst_6 = arith.constant 5.000000e-01 : f32
    %9 = vector.broadcast %cst_6 : f32 to vector<16x128xf32>
    %10 = arith.mulf %9, %8 : vector<16x128xf32>
    %cst_7 = arith.constant 0.707106769 : f32
    %11 = vector.broadcast %cst_7 : f32 to vector<16x128xf32>
    %12 = arith.mulf %8, %11 : vector<16x128xf32>
    %13 = math.erf %12 : vector<16x128xf32>
    %cst_8 = arith.constant 1.000000e+00 : f32
    %14 = vector.broadcast %cst_8 : f32 to vector<16x128xf32>
    %15 = arith.addf %14, %13 : vector<16x128xf32>
    %16 = arith.mulf %10, %15 : vector<16x128xf32>
    %c0_9 = arith.constant 0 : index
    %c0_10 = arith.constant 0 : index
    %17 = vector.load %arg10[%c0_9, %c0_10] : memref<16x32xf32, #tpu.memory_space<vmem>>, vector<16x32xf32>
    %c0_11 = arith.constant 0 : index
    %c0_12 = arith.constant 0 : index
    %18 = vector.load %arg5[%c0_11, %c0_12] : memref<128x32xf32, #tpu.memory_space<vmem>>, vector<128x32xf32>
    %cst_13 = arith.constant dense<0.000000e+00> : vector<16x32xf32>
    %19 = tpu.matmul %16, %18, %cst_13 {dimension_numbers = #tpu.dot_dimension_numbers<[1], [0], [0], [1], [0, 0, 1, 1], [], []>} : vector<16x128xf32>, vector<128x32xf32>, vector<16x32xf32> -> vector<16x32xf32>
    %20 = arith.addf %17, %19 : vector<16x32xf32>
    %c0_14 = arith.constant 0 : index
    %c0_15 = arith.constant 0 : index
    %21 = vector.load %arg10[%c0_14, %c0_15] : memref<16x32xf32, #tpu.memory_space<vmem>>, vector<16x32xf32>
    tpu.vector_store %arg10[%c0_14, %c0_15], %20 {strides = array<i32>} : memref<16x32xf32, #tpu.memory_space<vmem>>, vector<16x32xf32>,
    %c0_i32_16 = arith.constant 0 : i32
    %22 = arith.cmpi eq, %arg1, %c0_i32_16 : i32
    %23 = arith.extui %22 : i1 to i32
    %c0_i32_17 = arith.constant 0 : i32
    %24 = arith.cmpi ne, %23, %c0_i32_17 : i32
    scf.if %24 {
      %c0_18 = arith.constant 0 : index
      %c0_19 = arith.constant 0 : index
      %25 = vector.load %arg10[%c0_18, %c0_19] : memref<16x32xf32, #tpu.memory_space<vmem>>, vector<16x32xf32>
      %c0_20 = arith.constant 0 : index
      %c0_21 = arith.constant 0 : index
      %26 = vector.load %arg6[%c0_20, %c0_21] : memref<1x32xf32, #tpu.memory_space<vmem>>, vector<1x32xf32>
      %27 = vector.broadcast %26 : vector<1x32xf32> to vector<16x32xf32>
      %28 = arith.addf %25, %27 : vector<16x32xf32>
      %c0_22 = arith.constant 0 : index
      %c0_23 = arith.constant 0 : index
      %29 = vector.load %arg2[%c0_22, %c0_23] : memref<16x32xf32, #tpu.memory_space<vmem>>, vector<16x32xf32>
      %30 = arith.addf %28, %29 : vector<16x32xf32>
      %cst_24 = arith.constant dense<0.000000e+00> : vector<16xf32>
      %31 = vector.multi_reduction <add>, %30, %cst_24 [1] : vector<16x32xf32> to vector<16xf32>
      %32 = vector.shape_cast %31 : vector<16xf32> to vector<16x1xf32>
      %cst_25 = arith.constant 3.200000e+01 : f32
      %33 = vector.broadcast %cst_25 : f32 to vector<16x1xf32>
      %34 = arith.divf %32, %33 : vector<16x1xf32>
      %35 = vector.broadcast %34 : vector<16x1xf32> to vector<16x32xf32>
      %36 = arith.subf %30, %35 : vector<16x32xf32>
      %37 = vector.broadcast %34 : vector<16x1xf32> to vector<16x32xf32>
      %38 = arith.subf %30, %37 : vector<16x32xf32>
      %39 = arith.mulf %36, %38 : vector<16x32xf32>
      %cst_26 = arith.constant dense<0.000000e+00> : vector<16xf32>
      %40 = vector.multi_reduction <add>, %39, %cst_26 [1] : vector<16x32xf32> to vector<16xf32>
      %41 = vector.shape_cast %40 : vector<16xf32> to vector<16x1xf32>
      %cst_27 = arith.constant 3.200000e+01 : f32
      %42 = vector.broadcast %cst_27 : f32 to vector<16x1xf32>
      %43 = arith.divf %41, %42 : vector<16x1xf32>
      %44 = vector.broadcast %34 : vector<16x1xf32> to vector<16x32xf32>
      %45 = arith.subf %30, %44 : vector<16x32xf32>
      %cst_28 = arith.constant 9.99999996E-13 : f32
      %46 = vector.broadcast %cst_28 : f32 to vector<16x1xf32>
      %47 = arith.addf %43, %46 : vector<16x1xf32>
      %48 = math.rsqrt %47 : vector<16x1xf32>
      %49 = vector.broadcast %48 : vector<16x1xf32> to vector<16x32xf32>
      %50 = arith.mulf %45, %49 : vector<16x32xf32>
      %c0_29 = arith.constant 0 : index
      %c0_30 = arith.constant 0 : index
      %51 = vector.load %arg7[%c0_29, %c0_30] : memref<1x32xf32, #tpu.memory_space<vmem>>, vector<1x32xf32>
      %52 = vector.broadcast %51 : vector<1x32xf32> to vector<16x32xf32>
      %53 = arith.mulf %50, %52 : vector<16x32xf32>
      %c0_31 = arith.constant 0 : index
      %c0_32 = arith.constant 0 : index
      %54 = vector.load %arg8[%c0_31, %c0_32] : memref<1x32xf32, #tpu.memory_space<vmem>>, vector<1x32xf32>
      %55 = vector.broadcast %54 : vector<1x32xf32> to vector<16x32xf32>
      %56 = arith.addf %53, %55 : vector<16x32xf32>
      %c0_33 = arith.constant 0 : index
      %c0_34 = arith.constant 0 : index
      %57 = vector.load %arg9[%c0_33, %c0_34] : memref<16x32xf32, #tpu.memory_space<vmem>>, vector<16x32xf32>
      tpu.vector_store %arg9[%c0_33, %c0_34], %56 {strides = array<i32>} : memref<16x32xf32, #tpu.memory_space<vmem>>, vector<16x32xf32>,
    } else {
    }
    return
  }
  func.func @transform_0(%arg0: i32, %arg1: i32) -> (i32, i32) {
    %c0_i32 = arith.constant 0 : i32
    %c0_i32_0 = arith.constant 0 : i32
    return %arg0, %c0_i32 : i32, i32
  }
  func.func @transform_1(%arg0: i32, %arg1: i32) -> (i32, i32) {
    %c0_i32 = arith.constant 0 : i32
    %c0_i32_0 = arith.constant 0 : i32
    return %c0_i32, %arg1 : i32, i32
  }
  func.func @transform_2(%arg0: i32, %arg1: i32) -> (i32, i32) {
    %c0_i32 = arith.constant 0 : i32
    %c0_i32_0 = arith.constant 0 : i32
    return %c0_i32, %arg1 : i32, i32
  }
  func.func @transform_3(%arg0: i32, %arg1: i32) -> (i32, i32) {
    %c0_i32 = arith.constant 0 : i32
    %c0_i32_0 = arith.constant 0 : i32
    return %arg1, %c0_i32 : i32, i32
  }
  func.func @transform_4(%arg0: i32, %arg1: i32) -> (i32, i32) {
    %c0_i32 = arith.constant 0 : i32
    %c0_i32_0 = arith.constant 0 : i32
    %c0_i32_1 = arith.constant 0 : i32
    return %c0_i32, %c0_i32_0 : i32, i32
  }
  func.func @transform_5(%arg0: i32, %arg1: i32) -> (i32, i32) {
    %c0_i32 = arith.constant 0 : i32
    %c0_i32_0 = arith.constant 0 : i32
    %c0_i32_1 = arith.constant 0 : i32
    return %c0_i32, %c0_i32_0 : i32, i32
  }
  func.func @transform_6(%arg0: i32, %arg1: i32) -> (i32, i32) {
    %c0_i32 = arith.constant 0 : i32
    %c0_i32_0 = arith.constant 0 : i32
    %c0_i32_1 = arith.constant 0 : i32
    return %c0_i32, %c0_i32_0 : i32, i32
  }
  func.func @transform_7(%arg0: i32, %arg1: i32) -> (i32, i32) {
    %c0_i32 = arith.constant 0 : i32
    %c0_i32_0 = arith.constant 0 : i32
    return %arg0, %c0_i32 : i32, i32
  }
}

module attributes {stable_mosaic.version = 11 : i64} {
  func.func @_attn_kernel(%arg0: i32, %arg1: i32, %arg2: memref<1x4x8x8xf32, #tpu.memory_space<vmem>>, %arg3: memref<1x4x8x8xf32, #tpu.memory_space<vmem>>, %arg4: memref<1x4x8x8xf32, #tpu.memory_space<vmem>>, %arg5: memref<1x1x8xf32, #tpu.memory_space<vmem>>, %arg6: memref<1x8x32xf32, #tpu.memory_space<vmem>>, %arg7: memref<32x32xf32, #tpu.memory_space<vmem>>, %arg8: memref<1x32xf32, #tpu.memory_space<vmem>>, %arg9: memref<1x32xf32, #tpu.memory_space<vmem>>, %arg10: memref<1x32xf32, #tpu.memory_space<vmem>>, %arg11: memref<1x8x32xf32, #tpu.memory_space<vmem>>, %arg12: memref<8x32xf32, #tpu.memory_space<vmem>>) attributes {dimension_semantics = [#tpu.dimension_semantics<parallel>, #tpu.dimension_semantics<arbitrary>], iteration_bounds = array<i64: 2, 1>, scalar_prefetch = 0 : i64, scratch_operands = 1 : i64, tpu.core_type = #tpu.core_type<tc>, window_params = [{transform_indices = @transform_0, window_bounds = array<i64: 1, 4, 8, 8>}, {transform_indices = @transform_1, window_bounds = array<i64: 1, 4, 8, 8>}, {transform_indices = @transform_2, window_bounds = array<i64: 1, 4, 8, 8>}, {transform_indices = @transform_3, window_bounds = array<i64: 1, 1, 8>}, {transform_indices = @transform_4, window_bounds = array<i64: 1, 8, 32>}, {pipeline_mode = #tpu.pipeline_mode<synchronous>, transform_indices = @transform_5, window_bounds = array<i64: 32, 32>}, {pipeline_mode = #tpu.pipeline_mode<synchronous>, transform_indices = @transform_6, window_bounds = array<i64: 1, 32>}, {pipeline_mode = #tpu.pipeline_mode<synchronous>, transform_indices = @transform_7, window_bounds = array<i64: 1, 32>}, {pipeline_mode = #tpu.pipeline_mode<synchronous>, transform_indices = @transform_8, window_bounds = array<i64: 1, 32>}, {transform_indices = @transform_9, window_bounds = array<i64: 1, 8, 32>}]} {
    %c0_i32 = arith.constant 0 : i32
    %0 = arith.cmpi eq, %arg1, %c0_i32 : i32
    %1 = arith.extui %0 : i1 to i32
    %c0_i32_0 = arith.constant 0 : i32
    %2 = arith.cmpi ne, %1, %c0_i32_0 : i32
    scf.if %2 {
      %cst_76 = arith.constant 0.000000e+00 : f32
      %102 = vector.broadcast %cst_76 : f32 to vector<8x32xf32>
      %c0_77 = arith.constant 0 : index
      %c0_78 = arith.constant 0 : index
      %103 = vector.load %arg12[%c0_77, %c0_78] : memref<8x32xf32, #tpu.memory_space<vmem>>, vector<8x32xf32>
      tpu.vector_store %arg12[%c0_77, %c0_78], %102 {strides = array<i32>} : memref<8x32xf32, #tpu.memory_space<vmem>>, vector<8x32xf32>,
    } else {
    }
    %c0 = arith.constant 0 : index
    %c0_1 = arith.constant 0 : index
    %c0_2 = arith.constant 0 : index
    %3 = vector.load %arg5[%c0, %c0_1, %c0_2] : memref<1x1x8xf32, #tpu.memory_space<vmem>>, vector<1x1x8xf32>
    %4 = vector.shape_cast %3 : vector<1x1x8xf32> to vector<1x8xf32>
    %c0_3 = arith.constant 0 : index
    %c0_4 = arith.constant 0 : index
    %c0_5 = arith.constant 0 : index
    %c0_6 = arith.constant 0 : index
    %5 = vector.load %arg2[%c0_3, %c0_4, %c0_5, %c0_6] : memref<1x4x8x8xf32, #tpu.memory_space<vmem>>, vector<1x1x8x8xf32>
    %6 = vector.shape_cast %5 : vector<1x1x8x8xf32> to vector<8x8xf32>
    %cst = arith.constant 0.353553385 : f32
    %7 = vector.broadcast %cst : f32 to vector<8x8xf32>
    %8 = arith.mulf %6, %7 : vector<8x8xf32>
    %c0_7 = arith.constant 0 : index
    %c0_8 = arith.constant 0 : index
    %c0_9 = arith.constant 0 : index
    %c0_10 = arith.constant 0 : index
    %9 = vector.load %arg3[%c0_7, %c0_8, %c0_9, %c0_10] : memref<1x4x8x8xf32, #tpu.memory_space<vmem>>, vector<1x1x8x8xf32>
    %10 = vector.shape_cast %9 : vector<1x1x8x8xf32> to vector<8x8xf32>
    %c0_11 = arith.constant 0 : index
    %c0_12 = arith.constant 0 : index
    %c0_13 = arith.constant 0 : index
    %c0_14 = arith.constant 0 : index
    %11 = vector.load %arg4[%c0_11, %c0_12, %c0_13, %c0_14] : memref<1x4x8x8xf32, #tpu.memory_space<vmem>>, vector<1x1x8x8xf32>
    %12 = vector.shape_cast %11 : vector<1x1x8x8xf32> to vector<8x8xf32>
    %cst_15 = arith.constant dense<0.000000e+00> : vector<8x8xf32>
    %13 = tpu.matmul %8, %10, %cst_15 {dimension_numbers = #tpu.dot_dimension_numbers<[1], [1], [0], [0], [0, 0, 1, 0], [], []>} : vector<8x8xf32>, vector<8x8xf32>, vector<8x8xf32> -> vector<8x8xf32>
    %14 = vector.broadcast %4 : vector<1x8xf32> to vector<8x8xf32>
    %15 = arith.addf %13, %14 : vector<8x8xf32>
    %cst_16 = arith.constant dense<0xFF800000> : vector<8xf32>
    %16 = vector.multi_reduction <maximumf>, %15, %cst_16 [1] : vector<8x8xf32> to vector<8xf32>
    %17 = vector.shape_cast %16 : vector<8xf32> to vector<8x1xf32>
    %18 = vector.broadcast %17 : vector<8x1xf32> to vector<8x8xf32>
    %19 = arith.subf %15, %18 : vector<8x8xf32>
    %20 = math.exp %19 : vector<8x8xf32>
    %cst_17 = arith.constant dense<0.000000e+00> : vector<8xf32>
    %21 = vector.multi_reduction <add>, %20, %cst_17 [1] : vector<8x8xf32> to vector<8xf32>
    %22 = vector.shape_cast %21 : vector<8xf32> to vector<8x1xf32>
    %cst_18 = arith.constant dense<0.000000e+00> : vector<8x8xf32>
    %23 = tpu.matmul %20, %12, %cst_18 {dimension_numbers = #tpu.dot_dimension_numbers<[1], [0], [0], [1], [0, 0, 1, 1], [], []>} : vector<8x8xf32>, vector<8x8xf32>, vector<8x8xf32> -> vector<8x8xf32>
    %24 = tpu.reciprocal %22 {approx = true} : vector<8x1xf32> -> vector<8x1xf32>
    %25 = vector.broadcast %24 : vector<8x1xf32> to vector<8x8xf32>
    %26 = arith.mulf %23, %25 : vector<8x8xf32>
    %c0_19 = arith.constant 0 : index
    %c1 = arith.constant 1 : index
    %c0_20 = arith.constant 0 : index
    %c0_21 = arith.constant 0 : index
    %27 = vector.load %arg2[%c0_19, %c1, %c0_20, %c0_21] : memref<1x4x8x8xf32, #tpu.memory_space<vmem>>, vector<1x1x8x8xf32>
    %28 = vector.shape_cast %27 : vector<1x1x8x8xf32> to vector<8x8xf32>
    %cst_22 = arith.constant 0.353553385 : f32
    %29 = vector.broadcast %cst_22 : f32 to vector<8x8xf32>
    %30 = arith.mulf %28, %29 : vector<8x8xf32>
    %c0_23 = arith.constant 0 : index
    %c1_24 = arith.constant 1 : index
    %c0_25 = arith.constant 0 : index
    %c0_26 = arith.constant 0 : index
    %31 = vector.load %arg3[%c0_23, %c1_24, %c0_25, %c0_26] : memref<1x4x8x8xf32, #tpu.memory_space<vmem>>, vector<1x1x8x8xf32>
    %32 = vector.shape_cast %31 : vector<1x1x8x8xf32> to vector<8x8xf32>
    %c0_27 = arith.constant 0 : index
    %c1_28 = arith.constant 1 : index
    %c0_29 = arith.constant 0 : index
    %c0_30 = arith.constant 0 : index
    %33 = vector.load %arg4[%c0_27, %c1_28, %c0_29, %c0_30] : memref<1x4x8x8xf32, #tpu.memory_space<vmem>>, vector<1x1x8x8xf32>
    %34 = vector.shape_cast %33 : vector<1x1x8x8xf32> to vector<8x8xf32>
    %cst_31 = arith.constant dense<0.000000e+00> : vector<8x8xf32>
    %35 = tpu.matmul %30, %32, %cst_31 {dimension_numbers = #tpu.dot_dimension_numbers<[1], [1], [0], [0], [0, 0, 1, 0], [], []>} : vector<8x8xf32>, vector<8x8xf32>, vector<8x8xf32> -> vector<8x8xf32>
    %36 = vector.broadcast %4 : vector<1x8xf32> to vector<8x8xf32>
    %37 = arith.addf %35, %36 : vector<8x8xf32>
    %cst_32 = arith.constant dense<0xFF800000> : vector<8xf32>
    %38 = vector.multi_reduction <maximumf>, %37, %cst_32 [1] : vector<8x8xf32> to vector<8xf32>
    %39 = vector.shape_cast %38 : vector<8xf32> to vector<8x1xf32>
    %40 = vector.broadcast %39 : vector<8x1xf32> to vector<8x8xf32>
    %41 = arith.subf %37, %40 : vector<8x8xf32>
    %42 = math.exp %41 : vector<8x8xf32>
    %cst_33 = arith.constant dense<0.000000e+00> : vector<8xf32>
    %43 = vector.multi_reduction <add>, %42, %cst_33 [1] : vector<8x8xf32> to vector<8xf32>
    %44 = vector.shape_cast %43 : vector<8xf32> to vector<8x1xf32>
    %cst_34 = arith.constant dense<0.000000e+00> : vector<8x8xf32>
    %45 = tpu.matmul %42, %34, %cst_34 {dimension_numbers = #tpu.dot_dimension_numbers<[1], [0], [0], [1], [0, 0, 1, 1], [], []>} : vector<8x8xf32>, vector<8x8xf32>, vector<8x8xf32> -> vector<8x8xf32>
    %46 = tpu.reciprocal %44 {approx = true} : vector<8x1xf32> -> vector<8x1xf32>
    %47 = vector.broadcast %46 : vector<8x1xf32> to vector<8x8xf32>
    %48 = arith.mulf %45, %47 : vector<8x8xf32>
    %c0_35 = arith.constant 0 : index
    %c2 = arith.constant 2 : index
    %c0_36 = arith.constant 0 : index
    %c0_37 = arith.constant 0 : index
    %49 = vector.load %arg2[%c0_35, %c2, %c0_36, %c0_37] : memref<1x4x8x8xf32, #tpu.memory_space<vmem>>, vector<1x1x8x8xf32>
    %50 = vector.shape_cast %49 : vector<1x1x8x8xf32> to vector<8x8xf32>
    %cst_38 = arith.constant 0.353553385 : f32
    %51 = vector.broadcast %cst_38 : f32 to vector<8x8xf32>
    %52 = arith.mulf %50, %51 : vector<8x8xf32>
    %c0_39 = arith.constant 0 : index
    %c2_40 = arith.constant 2 : index
    %c0_41 = arith.constant 0 : index
    %c0_42 = arith.constant 0 : index
    %53 = vector.load %arg3[%c0_39, %c2_40, %c0_41, %c0_42] : memref<1x4x8x8xf32, #tpu.memory_space<vmem>>, vector<1x1x8x8xf32>
    %54 = vector.shape_cast %53 : vector<1x1x8x8xf32> to vector<8x8xf32>
    %c0_43 = arith.constant 0 : index
    %c2_44 = arith.constant 2 : index
    %c0_45 = arith.constant 0 : index
    %c0_46 = arith.constant 0 : index
    %55 = vector.load %arg4[%c0_43, %c2_44, %c0_45, %c0_46] : memref<1x4x8x8xf32, #tpu.memory_space<vmem>>, vector<1x1x8x8xf32>
    %56 = vector.shape_cast %55 : vector<1x1x8x8xf32> to vector<8x8xf32>
    %cst_47 = arith.constant dense<0.000000e+00> : vector<8x8xf32>
    %57 = tpu.matmul %52, %54, %cst_47 {dimension_numbers = #tpu.dot_dimension_numbers<[1], [1], [0], [0], [0, 0, 1, 0], [], []>} : vector<8x8xf32>, vector<8x8xf32>, vector<8x8xf32> -> vector<8x8xf32>
    %58 = vector.broadcast %4 : vector<1x8xf32> to vector<8x8xf32>
    %59 = arith.addf %57, %58 : vector<8x8xf32>
    %cst_48 = arith.constant dense<0xFF800000> : vector<8xf32>
    %60 = vector.multi_reduction <maximumf>, %59, %cst_48 [1] : vector<8x8xf32> to vector<8xf32>
    %61 = vector.shape_cast %60 : vector<8xf32> to vector<8x1xf32>
    %62 = vector.broadcast %61 : vector<8x1xf32> to vector<8x8xf32>
    %63 = arith.subf %59, %62 : vector<8x8xf32>
    %64 = math.exp %63 : vector<8x8xf32>
    %cst_49 = arith.constant dense<0.000000e+00> : vector<8xf32>
    %65 = vector.multi_reduction <add>, %64, %cst_49 [1] : vector<8x8xf32> to vector<8xf32>
    %66 = vector.shape_cast %65 : vector<8xf32> to vector<8x1xf32>
    %cst_50 = arith.constant dense<0.000000e+00> : vector<8x8xf32>
    %67 = tpu.matmul %64, %56, %cst_50 {dimension_numbers = #tpu.dot_dimension_numbers<[1], [0], [0], [1], [0, 0, 1, 1], [], []>} : vector<8x8xf32>, vector<8x8xf32>, vector<8x8xf32> -> vector<8x8xf32>
    %68 = tpu.reciprocal %66 {approx = true} : vector<8x1xf32> -> vector<8x1xf32>
    %69 = vector.broadcast %68 : vector<8x1xf32> to vector<8x8xf32>
    %70 = arith.mulf %67, %69 : vector<8x8xf32>
    %c0_51 = arith.constant 0 : index
    %c3 = arith.constant 3 : index
    %c0_52 = arith.constant 0 : index
    %c0_53 = arith.constant 0 : index
    %71 = vector.load %arg2[%c0_51, %c3, %c0_52, %c0_53] : memref<1x4x8x8xf32, #tpu.memory_space<vmem>>, vector<1x1x8x8xf32>
    %72 = vector.shape_cast %71 : vector<1x1x8x8xf32> to vector<8x8xf32>
    %cst_54 = arith.constant 0.353553385 : f32
    %73 = vector.broadcast %cst_54 : f32 to vector<8x8xf32>
    %74 = arith.mulf %72, %73 : vector<8x8xf32>
    %c0_55 = arith.constant 0 : index
    %c3_56 = arith.constant 3 : index
    %c0_57 = arith.constant 0 : index
    %c0_58 = arith.constant 0 : index
    %75 = vector.load %arg3[%c0_55, %c3_56, %c0_57, %c0_58] : memref<1x4x8x8xf32, #tpu.memory_space<vmem>>, vector<1x1x8x8xf32>
    %76 = vector.shape_cast %75 : vector<1x1x8x8xf32> to vector<8x8xf32>
    %c0_59 = arith.constant 0 : index
    %c3_60 = arith.constant 3 : index
    %c0_61 = arith.constant 0 : index
    %c0_62 = arith.constant 0 : index
    %77 = vector.load %arg4[%c0_59, %c3_60, %c0_61, %c0_62] : memref<1x4x8x8xf32, #tpu.memory_space<vmem>>, vector<1x1x8x8xf32>
    %78 = vector.shape_cast %77 : vector<1x1x8x8xf32> to vector<8x8xf32>
    %cst_63 = arith.constant dense<0.000000e+00> : vector<8x8xf32>
    %79 = tpu.matmul %74, %76, %cst_63 {dimension_numbers = #tpu.dot_dimension_numbers<[1], [1], [0], [0], [0, 0, 1, 0], [], []>} : vector<8x8xf32>, vector<8x8xf32>, vector<8x8xf32> -> vector<8x8xf32>
    %80 = vector.broadcast %4 : vector<1x8xf32> to vector<8x8xf32>
    %81 = arith.addf %79, %80 : vector<8x8xf32>
    %cst_64 = arith.constant dense<0xFF800000> : vector<8xf32>
    %82 = vector.multi_reduction <maximumf>, %81, %cst_64 [1] : vector<8x8xf32> to vector<8xf32>
    %83 = vector.shape_cast %82 : vector<8xf32> to vector<8x1xf32>
    %84 = vector.broadcast %83 : vector<8x1xf32> to vector<8x8xf32>
    %85 = arith.subf %81, %84 : vector<8x8xf32>
    %86 = math.exp %85 : vector<8x8xf32>
    %cst_65 = arith.constant dense<0.000000e+00> : vector<8xf32>
    %87 = vector.multi_reduction <add>, %86, %cst_65 [1] : vector<8x8xf32> to vector<8xf32>
    %88 = vector.shape_cast %87 : vector<8xf32> to vector<8x1xf32>
    %cst_66 = arith.constant dense<0.000000e+00> : vector<8x8xf32>
    %89 = tpu.matmul %86, %78, %cst_66 {dimension_numbers = #tpu.dot_dimension_numbers<[1], [0], [0], [1], [0, 0, 1, 1], [], []>} : vector<8x8xf32>, vector<8x8xf32>, vector<8x8xf32> -> vector<8x8xf32>
    %90 = tpu.reciprocal %88 {approx = true} : vector<8x1xf32> -> vector<8x1xf32>
    %91 = vector.broadcast %90 : vector<8x1xf32> to vector<8x8xf32>
    %92 = arith.mulf %89, %91 : vector<8x8xf32>
    %93 = tpu.concatenate %26, %48, %70, %92 in 1 : vector<8x8xf32>, vector<8x8xf32>, vector<8x8xf32>, vector<8x8xf32> -> vector<8x32xf32>
    %c0_67 = arith.constant 0 : index
    %c0_68 = arith.constant 0 : index
    %94 = vector.load %arg7[%c0_67, %c0_68] : memref<32x32xf32, #tpu.memory_space<vmem>>, vector<32x32xf32>
    %c0_69 = arith.constant 0 : index
    %c0_70 = arith.constant 0 : index
    %95 = vector.load %arg12[%c0_69, %c0_70] : memref<8x32xf32, #tpu.memory_space<vmem>>, vector<8x32xf32>
    %cst_71 = arith.constant dense<0.000000e+00> : vector<8x32xf32>
    %96 = tpu.matmul %93, %94, %cst_71 {dimension_numbers = #tpu.dot_dimension_numbers<[1], [0], [0], [1], [0, 0, 1, 1], [], []>} : vector<8x32xf32>, vector<32x32xf32>, vector<8x32xf32> -> vector<8x32xf32>
    %97 = arith.addf %95, %96 : vector<8x32xf32>
    %c0_72 = arith.constant 0 : index
    %c0_73 = arith.constant 0 : index
    %98 = vector.load %arg12[%c0_72, %c0_73] : memref<8x32xf32, #tpu.memory_space<vmem>>, vector<8x32xf32>
    tpu.vector_store %arg12[%c0_72, %c0_73], %97 {strides = array<i32>} : memref<8x32xf32, #tpu.memory_space<vmem>>, vector<8x32xf32>,
    %c0_i32_74 = arith.constant 0 : i32
    %99 = arith.cmpi eq, %arg1, %c0_i32_74 : i32
    %100 = arith.extui %99 : i1 to i32
    %c0_i32_75 = arith.constant 0 : i32
    %101 = arith.cmpi ne, %100, %c0_i32_75 : i32
    scf.if %101 {
      %c0_76 = arith.constant 0 : index
      %c0_77 = arith.constant 0 : index
      %102 = vector.load %arg12[%c0_76, %c0_77] : memref<8x32xf32, #tpu.memory_space<vmem>>, vector<8x32xf32>
      %c0_78 = arith.constant 0 : index
      %c0_79 = arith.constant 0 : index
      %103 = vector.load %arg8[%c0_78, %c0_79] : memref<1x32xf32, #tpu.memory_space<vmem>>, vector<1x32xf32>
      %104 = vector.broadcast %103 : vector<1x32xf32> to vector<8x32xf32>
      %105 = arith.addf %102, %104 : vector<8x32xf32>
      %c0_80 = arith.constant 0 : index
      %c0_81 = arith.constant 0 : index
      %c0_82 = arith.constant 0 : index
      %106 = vector.load %arg6[%c0_80, %c0_81, %c0_82] : memref<1x8x32xf32, #tpu.memory_space<vmem>>, vector<1x8x32xf32>
      %107 = vector.shape_cast %106 : vector<1x8x32xf32> to vector<8x32xf32>
      %108 = arith.addf %105, %107 : vector<8x32xf32>
      %cst_83 = arith.constant dense<0.000000e+00> : vector<8xf32>
      %109 = vector.multi_reduction <add>, %108, %cst_83 [1] : vector<8x32xf32> to vector<8xf32>
      %110 = vector.shape_cast %109 : vector<8xf32> to vector<8x1xf32>
      %cst_84 = arith.constant 3.200000e+01 : f32
      %111 = vector.broadcast %cst_84 : f32 to vector<8x1xf32>
      %112 = arith.divf %110, %111 : vector<8x1xf32>
      %113 = vector.broadcast %112 : vector<8x1xf32> to vector<8x32xf32>
      %114 = arith.subf %108, %113 : vector<8x32xf32>
      %115 = vector.broadcast %112 : vector<8x1xf32> to vector<8x32xf32>
      %116 = arith.subf %108, %115 : vector<8x32xf32>
      %117 = arith.mulf %114, %116 : vector<8x32xf32>
      %cst_85 = arith.constant dense<0.000000e+00> : vector<8xf32>
      %118 = vector.multi_reduction <add>, %117, %cst_85 [1] : vector<8x32xf32> to vector<8xf32>
      %119 = vector.shape_cast %118 : vector<8xf32> to vector<8x1xf32>
      %cst_86 = arith.constant 3.200000e+01 : f32
      %120 = vector.broadcast %cst_86 : f32 to vector<8x1xf32>
      %121 = arith.divf %119, %120 : vector<8x1xf32>
      %122 = vector.broadcast %112 : vector<8x1xf32> to vector<8x32xf32>
      %123 = arith.subf %108, %122 : vector<8x32xf32>
      %cst_87 = arith.constant 9.99999996E-13 : f32
      %124 = vector.broadcast %cst_87 : f32 to vector<8x1xf32>
      %125 = arith.addf %121, %124 : vector<8x1xf32>
      %126 = math.rsqrt %125 : vector<8x1xf32>
      %127 = vector.broadcast %126 : vector<8x1xf32> to vector<8x32xf32>
      %128 = arith.mulf %123, %127 : vector<8x32xf32>
      %c0_88 = arith.constant 0 : index
      %c0_89 = arith.constant 0 : index
      %129 = vector.load %arg9[%c0_88, %c0_89] : memref<1x32xf32, #tpu.memory_space<vmem>>, vector<1x32xf32>
      %130 = vector.broadcast %129 : vector<1x32xf32> to vector<8x32xf32>
      %131 = arith.mulf %128, %130 : vector<8x32xf32>
      %c0_90 = arith.constant 0 : index
      %c0_91 = arith.constant 0 : index
      %132 = vector.load %arg10[%c0_90, %c0_91] : memref<1x32xf32, #tpu.memory_space<vmem>>, vector<1x32xf32>
      %133 = vector.broadcast %132 : vector<1x32xf32> to vector<8x32xf32>
      %134 = arith.addf %131, %133 : vector<8x32xf32>
      %c0_92 = arith.constant 0 : index
      %c0_93 = arith.constant 0 : index
      %c0_94 = arith.constant 0 : index
      %135 = vector.load %arg11[%c0_92, %c0_93, %c0_94] : memref<1x8x32xf32, #tpu.memory_space<vmem>>, vector<1x8x32xf32>
      %136 = vector.shape_cast %135 : vector<1x8x32xf32> to vector<8x32xf32>
      %137 = vector.shape_cast %134 : vector<8x32xf32> to vector<1x8x32xf32>
      tpu.vector_store %arg11[%c0_92, %c0_93, %c0_94], %137 {strides = array<i32>} : memref<1x8x32xf32, #tpu.memory_space<vmem>>, vector<1x8x32xf32>,
    } else {
    }
    return
  }
  func.func @transform_0(%arg0: i32, %arg1: i32) -> (i32, i32, i32, i32) {
    %c0_i32 = arith.constant 0 : i32
    %c0_i32_0 = arith.constant 0 : i32
    %c0_i32_1 = arith.constant 0 : i32
    return %arg0, %arg1, %c0_i32, %c0_i32_0 : i32, i32, i32, i32
  }
  func.func @transform_1(%arg0: i32, %arg1: i32) -> (i32, i32, i32, i32) {
    %c0_i32 = arith.constant 0 : i32
    %c0_i32_0 = arith.constant 0 : i32
    %c0_i32_1 = arith.constant 0 : i32
    return %arg0, %arg1, %c0_i32, %c0_i32_0 : i32, i32, i32, i32
  }
  func.func @transform_2(%arg0: i32, %arg1: i32) -> (i32, i32, i32, i32) {
    %c0_i32 = arith.constant 0 : i32
    %c0_i32_0 = arith.constant 0 : i32
    %c0_i32_1 = arith.constant 0 : i32
    return %arg0, %arg1, %c0_i32, %c0_i32_0 : i32, i32, i32, i32
  }
  func.func @transform_3(%arg0: i32, %arg1: i32) -> (i32, i32, i32) {
    %c0_i32 = arith.constant 0 : i32
    %c0_i32_0 = arith.constant 0 : i32
    %c0_i32_1 = arith.constant 0 : i32
    return %arg0, %c0_i32, %c0_i32_0 : i32, i32, i32
  }
  func.func @transform_4(%arg0: i32, %arg1: i32) -> (i32, i32, i32) {
    %c0_i32 = arith.constant 0 : i32
    %c0_i32_0 = arith.constant 0 : i32
    %c0_i32_1 = arith.constant 0 : i32
    return %arg0, %c0_i32, %c0_i32_0 : i32, i32, i32
  }
  func.func @transform_5(%arg0: i32, %arg1: i32) -> (i32, i32) {
    %c0_i32 = arith.constant 0 : i32
    %c0_i32_0 = arith.constant 0 : i32
    %c0_i32_1 = arith.constant 0 : i32
    return %c0_i32, %c0_i32_0 : i32, i32
  }
  func.func @transform_6(%arg0: i32, %arg1: i32) -> (i32, i32) {
    %c0_i32 = arith.constant 0 : i32
    %c0_i32_0 = arith.constant 0 : i32
    %c0_i32_1 = arith.constant 0 : i32
    return %c0_i32, %c0_i32_0 : i32, i32
  }
  func.func @transform_7(%arg0: i32, %arg1: i32) -> (i32, i32) {
    %c0_i32 = arith.constant 0 : i32
    %c0_i32_0 = arith.constant 0 : i32
    %c0_i32_1 = arith.constant 0 : i32
    return %c0_i32, %c0_i32_0 : i32, i32
  }
  func.func @transform_8(%arg0: i32, %arg1: i32) -> (i32, i32) {
    %c0_i32 = arith.constant 0 : i32
    %c0_i32_0 = arith.constant 0 : i32
    %c0_i32_1 = arith.constant 0 : i32
    return %c0_i32, %c0_i32_0 : i32, i32
  }
  func.func @transform_9(%arg0: i32, %arg1: i32) -> (i32, i32, i32) {
    %c0_i32 = arith.constant 0 : i32
    %c0_i32_0 = arith.constant 0 : i32
    %c0_i32_1 = arith.constant 0 : i32
    return %arg0, %c0_i32, %c0_i32_0 : i32, i32, i32
  }
}

</mosaic_0001>

<bundles_post_ra>
// kernel: bert_encoder.6
= control target key start
LH: loop header
LB: loop body
LE: loop exit
PB: predicated region body
PF: predicated region fallthrough
CT: control target
= control target key end

     0   :  { %vm27_vm0 = vcmask 261120   ;;  %vm109_vm1 = vcmask 785408   ;;  %s191_s1 = inlined_call_operand.vmem [shape: f32[32,96], index: 1, kind: input, shape index: {}]   ;;  %s192_s0 = inlined_call_operand.vmem [shape: f32[16,32], index: 0, kind: input, shape index: {}]   ;;  %s193_s2 = inlined_call_operand.vmem [shape: f32[1,96], index: 2, kind: input, shape index: {}]   ;;  %s194_s3 = inlined_call_operand.vmem [shape: f32[16,96], index: 3, kind: output, shape index: {}]  }
   0x1   :  { %v16_v0 = vld [vmem:[%s191_s1] sm:$0xff]  ;;  %v17_v1 = vld [vmem:[%s191_s1 + $0x8] sm:$0xff]  ;;  %v18_v2 = vld [vmem:[%s191_s1 + $0x10] sm:$0xff] }
   0x2   :  { %v136_v3 = vpack.c.bf16 %v17_v1, %v16_v0  ;;  %v19_v4 = vld [vmem:[%s191_s1 + $0x18] sm:$0xff]  ;;  %v14_v5 = vld [vmem:[%s192_s0] sm:$0xff]  ;;  %v15_v7 = vld [vmem:[%s192_s0 + $0x8] sm:$0xff] }
   0x3   :  { %v140_v6 = vpack.c.bf16 %v19_v4, %v18_v2  ;;  %133 = vmatprep.mubr.msk.f32.mxu0 %vm27_vm0, %v14_v5  ;;  %v116_v8 = vld [vmem:[%s193_s2] ss:$0 sm:$0xff] }
   0x4   :  { %137 = vmatprep.subr.bf16.mxu0 %v136_v3 }
   0x5   :  { %139 = vmatpush3.bf16.msra.mxu0 %v136_v3 }
   0x6   :  { %141 = vmatprep.subr.bf16.mxu0 %v140_v6 }
   0x9   :  { %143 = vmatpush3.bf16.msra.mxu0 %v140_v6 }
   0xc   :  { %134 = vmatmul.mubr.msk.f32.vlgmr.msra.gmra.mrb[0].mxu0 %vm27_vm0, %v15_v7 }
  0xdf   :  { %v135_v9 = vpop.f32.mrb[0].mxu0 }
  0xe0   :  { %v106_v10 = vadd.f32 %v135_v9, %v116_v8  ;;  %v100_v11 = vpop.f32.mrb[1].mxu0 }
  0xe1   :  { %v101_v12 = vadd.f32 %v116_v8, %v100_v11 }
  0xe2   :  { %111 = vst.msk [vmem:[%s194_s3 + $0x8] sm:$0xff] %vm109_vm1, %v106_v10 }
  0xe3   :  { %110 = vst.msk [vmem:[%s194_s3] sm:$0xff] %vm109_vm1, %v101_v12 }

// kernel: bert_encoder.8
= control target key start
LH: loop header
LB: loop body
LE: loop exit
PB: predicated region body
PF: predicated region fallthrough
CT: control target
= control target key end

     0   :  { %vm30_vm0 = vcmask 261120   ;;  %v429_v32 = vmov 0.0   ;;  %s574_s1 = inlined_call_operand.vmem [shape: f32[32,128], index: 1, kind: input, shape index: {}]   ;;  %s575_s0 = inlined_call_operand.vmem [shape: f32[16,32], index: 0, kind: input, shape index: {}]   ;;  %s576_s3 = inlined_call_operand.vmem [shape: f32[128,32], index: 3, kind: input, shape index: {}]   ;;  %s577_s2 = inlined_call_operand.vmem [shape: f32[1,128], index: 2, kind: input, shape index: {}]   ;;  %s578_s4 = inlined_call_operand.vmem [shape: f32[1,32], index: 4, kind: input, shape index: {}]   ;;  %s579_s5 = inlined_call_operand.vmem [shape: f32[1,32], index: 5, kind: input, shape index: {}]   ;;  %s580_s6 = inlined_call_operand.vmem [shape: f32[1,32], index: 6, kind: input, shape index: {}]   ;;  %s581_s7 = inlined_call_operand.vmem [shape: f32[16,32], index: 7, kind: output, shape index: {}]  }
   0x1   :  { %v35_v0 = vld [vmem:[%s574_s1] sm:$0xff]  ;;  %v36_v1 = vld [vmem:[%s574_s1 + $0x8] sm:$0xff]  ;;  %v37_v2 = vld [vmem:[%s574_s1 + $0x10] sm:$0xff]  ;;  %32 = vst.msk [vmem:[#allocation2 + $0x8] sm:$0xff] %vm30_vm0, %v429_v32 }
   0x2   :  { %v380_v3 = vpack.c.bf16 %v36_v1, %v35_v0  ;;  %v38_v4 = vld [vmem:[%s574_s1 + $0x18] sm:$0xff]  ;;  %v485_v5 = vld [vmem:[%s575_s0] sm:$0xff]  ;;  %v141_v8 = vld [vmem:[%s576_s3 + $0x8] sm:$0xff]  ;;  %31 = vst.msk [vmem:[#allocation2] sm:$0xff] %vm30_vm0, %v429_v32 }
   0x3   :  { %v384_v6 = vpack.c.bf16 %v38_v4, %v37_v2  ;;  %342 = vmatprep.mubr.msk.f32.mxu0 %vm30_vm0, %v485_v5  ;;  %v140_v7 = vld [vmem:[%s576_s3] sm:$0xff]  ;;  %v142_v9 = vld [vmem:[%s576_s3 + $0x10] sm:$0xff]  ;;  %v143_v11 = vld [vmem:[%s576_s3 + $0x18] sm:$0xff] }
   0x4   :  { %381 = vmatprep.subr.bf16.mxu0 %v380_v3  ;;  %v388_v10 = vpack.c.bf16 %v141_v8, %v140_v7  ;;  %v392_v12 = vpack.c.bf16 %v143_v11, %v142_v9  ;;  %v144_v13 = vld [vmem:[%s576_s3 + $0x20] sm:$0xff]  ;;  %v145_v14 = vld [vmem:[%s576_s3 + $0x28] sm:$0xff]  ;;  %v146_v17 = vld [vmem:[%s576_s3 + $0x30] sm:$0xff] }
   0x5   :  { %383 = vmatpush3.bf16.msra.mxu0 %v380_v3  ;;  %v396_v15 = vpack.c.bf16 %v145_v14, %v144_v13  ;;  %v510_v16 = vld [vmem:[%s575_s0 + $0x8] sm:$0xff]  ;;  %v147_v18 = vld [vmem:[%s576_s3 + $0x38] sm:$0xff]  ;;  %v148_v20 = vld [vmem:[%s576_s3 + $0x40] sm:$0xff] }
   0x6   :  { %385 = vmatprep.subr.bf16.mxu0 %v384_v6  ;;  %389 = vmatprep.subr.bf16.mxu1 %v388_v10  ;;  %v400_v19 = vpack.c.bf16 %v147_v18, %v146_v17  ;;  %v149_v21 = vld [vmem:[%s576_s3 + $0x48] sm:$0xff]  ;;  %v150_v23 = vld [vmem:[%s576_s3 + $0x50] sm:$0xff]  ;;  %v151_v24 = vld [vmem:[%s576_s3 + $0x58] sm:$0xff] }
   0x7   :  { %391 = vmatpush3.bf16.msra.mxu1 %v388_v10  ;;  %v404_v22 = vpack.c.bf16 %v149_v21, %v148_v20  ;;  %v408_v25 = vpack.c.bf16 %v151_v24, %v150_v23  ;;  %v152_v26 = vld [vmem:[%s576_s3 + $0x60] sm:$0xff]  ;;  %v153_v27 = vld [vmem:[%s576_s3 + $0x68] sm:$0xff]  ;;  %v154_v29 = vld [vmem:[%s576_s3 + $0x70] sm:$0xff] }
   0x8   :  { %393 = vmatprep.subr.bf16.mxu1 %v392_v12  ;;  %v412_v28 = vpack.c.bf16 %v153_v27, %v152_v26  ;;  %v155_v30 = vld [vmem:[%s576_s3 + $0x78] sm:$0xff]  ;;  %v304_v33 = vld [vmem:[%s577_s2] ss:$0 sm:$0xff]  ;;  %v139_v48 = vld [vmem:[#allocation2 + $0x8] sm:$0xff] }
   0x9   :  { %387 = vmatpush3.bf16.msra.mxu0 %v384_v6  ;;  %v416_v31 = vpack.c.bf16 %v155_v30, %v154_v29  ;;  %v138_v49 = vld [vmem:[#allocation2] sm:$0xff] }
   0xa   :  { %v307_v54 = vld [vmem:[%s578_s4] ss:$0 sm:$0xff] }
   0xb   :  { %395 = vmatpush3.bf16.msra.mxu1 %v392_v12  ;;  %v309_v18 = vld [vmem:[%s580_s6] ss:$0 sm:$0xff] }
   0xc   :  { %343 = vmatmul.mubr.msk.f32.vlgmr.msra.gmra.mrb[0].mxu0 %vm30_vm0, %v510_v16  ;;  %397 = vmatprep.subr.bf16.mxu1 %v396_v15 }
   0xf   :  { %399 = vmatpush3.bf16.msra.mxu1 %v396_v15 }
  0x10   :  { %401 = vmatprep.subr.bf16.mxu1 %v400_v19 }
  0x13   :  { %403 = vmatpush3.bf16.msra.mxu1 %v400_v19 }
  0x14   :  { %405 = vmatprep.subr.bf16.mxu1 %v404_v22 }
  0x17   :  { %407 = vmatpush3.bf16.msra.mxu1 %v404_v22 }
  0x18   :  { %409 = vmatprep.subr.bf16.mxu1 %v408_v25 }
  0x1b   :  { %411 = vmatpush3.bf16.msra.mxu1 %v408_v25 }
  0x1c   :  { %413 = vmatprep.subr.bf16.mxu1 %v412_v28 }
  0x1f   :  { %415 = vmatpush3.bf16.msra.mxu1 %v412_v28 }
  0x20   :  { %417 = vmatprep.subr.bf16.mxu1 %v416_v31 }
  0x23   :  { %419 = vmatpush3.bf16.msra.mxu1 %v416_v31 }
  0xdf   :  { %v344_v34 = vpop.f32.mrb[0].mxu0 }
  0xe0   :  { %v125_v35 = vadd.f32 %v344_v34, %v304_v33  ;;  %v119_v36 = vpop.f32.mrb[1].mxu0 }
  0xe1   :  { %v120_v37 = vadd.f32 %v304_v33, %v119_v36 }
  0xe2   :  { %v131_v38 = vmul.f32 0.70710677, %v125_v35  ;;  %v129_v45 = vmul.f32 0.5, %v125_v35 }
  0xe3   :  { %v130_v39 = vmul.f32 0.70710677, %v120_v37  ;;  %v128_v43 = vmul.f32 0.5, %v120_v37 }
  0xe4   :  { %421 = verf.f32 %v131_v38 }
  0xe5   :  { %423 = verf.f32 %v130_v39 }
  0xee   :  { %v422_v40 = vpop.eup %421 }
  0xef   :  { %v424_v41 = vpop.eup %423  ;;  %v135_v42 = vadd.f32 1.0, %v422_v40 }
  0xf0   :  { %v134_v44 = vadd.f32 1.0, %v424_v41 }
  0xf1   :  { %v137_v47 = vmul.f32 %v135_v42, %v129_v45 }
  0xf2   :  { %v136_v46 = vmul.f32 %v134_v44, %v128_v43 }
  0xf4   :  { %377 = vmatprep.mubr.f32.mxu1 %v136_v46 }
  0xf5   :  { %378 = vmatmul.mubr.f32.vlgmr.msra.gmra.mrb[0].mxu1 %v137_v47 }
 0x1c8   :  { %v379_v50 = vpop.f32.mrb[0].mxu1 }
 0x1c9   :  { %v232_v51 = vadd.f32 %v379_v50, %v139_v48  ;;  %v222_v52 = vpop.f32.mrb[1].mxu1 }
 0x1ca   :  { %v231_v53 = vadd.f32 %v222_v52, %v138_v49 }
 0x1cb   :  { %234 = vst.msk [vmem:[#allocation2 + $0x8] sm:$0xff] %vm30_vm0, %v232_v51 }
 0x1cc   :  { %233 = vst.msk [vmem:[#allocation2] sm:$0xff] %vm30_vm0, %v231_v53 }
 0x1d2   :  { %v239_v55 = vld [vmem:[#allocation2 + $0x8] sm:$0xff] }
 0x1d3   :  { %v238_v56 = vld [vmem:[#allocation2] sm:$0xff]  ;;  %v248_v58 = vadd.f32 %v307_v54, %v239_v55 }
 0x1d4   :  { %v247_v57 = vadd.f32 %v307_v54, %v238_v56 }
 0x1d5   :  { %v252_v61 = vadd.f32 %v248_v58, %v510_v16  ;;  %v308_v16 = vld [vmem:[%s579_s5] ss:$0 sm:$0xff] }
 0x1d6   :  { %v251_v59 = vadd.f32 %v247_v57, %v485_v5 }
 0x1d7   :  { %v256_v62 = vsel %vm30_vm0, %v252_v61, 0.0 }
 0x1d8   :  { %v253_v60 = vsel %vm30_vm0, %v251_v59, 0.0 }
 0x1d9   :  { %254 = vadd.xlane.f32.xlu0 %v253_v60 }
 0x1dd   :  { %257 = vadd.xlane.f32.xlu0 %v256_v62 }
 0x266   :  { %v255_v63 = vpop.xlane.xlu0 %254 }
 0x267   :  { %v260_v0 = vmul.f32 0.03125, %v255_v63 }
 0x269   :  { %v262_v1 = vsub.f32 %v251_v59, %v260_v0 }
 0x26a   :  { %v258_v2 = vpop.xlane.xlu0 %257 }
 0x26b   :  { %v261_v3 = vmul.f32 0.03125, %v258_v2  ;;  %v264_v4 = vmul.f32 %v262_v1, %v262_v1 }
 0x26d   :  { %v263_v6 = vsub.f32 %v252_v61, %v261_v3  ;;  %v266_v7 = vsel %vm30_vm0, %v264_v4, 0.0 }
 0x26e   :  { %267 = vadd.xlane.f32.xlu1 %v266_v7 }
 0x26f   :  { %v265_v8 = vmul.f32 %v263_v6, %v263_v6 }
 0x271   :  { %v269_v5 = vsel %vm30_vm0, %v265_v8, 0.0 }
 0x272   :  { %270 = vadd.xlane.f32.xlu1 %v269_v5 }
 0x2fb   :  { %v268_v9 = vpop.xlane.xlu1 %267 }
 0x2fc   :  { %v272_v10 = vmul.f32 0.03125, %v268_v9 }
 0x2fe   :  { %v274_v11 = vadd.f32 1e-12, %v272_v10 }
 0x2ff   :  { %v271_v12 = vpop.xlane.xlu1 %270 }
 0x300   :  { %425 = vrsqrt.f32 %v274_v11  ;;  %v273_v13 = vmul.f32 0.03125, %v271_v12 }
 0x302   :  { %v275_v14 = vadd.f32 1e-12, %v273_v13 }
 0x304   :  { %427 = vrsqrt.f32 %v275_v14 }
 0x30a   :  { %v426_v15 = vpop.eup %425 }
 0x30b   :  { %v278_v17 = vmul.f32 %v426_v15, %v262_v1 }
 0x30d   :  { %v287_v19 = vmul.f32 %v308_v16, %v278_v17 }
 0x30e   :  { %v428_v20 = vpop.eup %427 }
 0x30f   :  { %v296_v21 = vadd.f32 %v309_v18, %v287_v19  ;;  %v279_v22 = vmul.f32 %v428_v20, %v263_v6 }
 0x311   :  { %298 = vst.msk [vmem:[%s581_s7] sm:$0xff] %vm30_vm0, %v296_v21  ;;  %v288_v23 = vmul.f32 %v308_v16, %v279_v22 }
 0x313   :  { %v297_v24 = vadd.f32 %v309_v18, %v288_v23 }
 0x315   :  { %299 = vst.msk [vmem:[%s581_s7 + $0x8] sm:$0xff] %vm30_vm0, %v297_v24 }

// kernel: bert_encoder.11
= control target key start
LH: loop header
LB: loop body
LE: loop exit
PB: predicated region body
PF: predicated region fallthrough
CT: control target
= control target key end

     0   :  { %vm31_vm0 = vcmask 261120   ;;  %s623_s0 = inlined_call_operand.vmem [shape: f32[16,32], index: 0, kind: input, shape index: {}]   ;;  %s624_s1 = inlined_call_operand.vmem [shape: f32[32,128], index: 1, kind: input, shape index: {}]   ;;  %s625_s2 = inlined_call_operand.vmem [shape: f32[1,128], index: 2, kind: input, shape index: {}]   ;;  %s626_s3 = inlined_call_operand.vmem [shape: f32[128,32], index: 3, kind: input, shape index: {}]   ;;  %s627_s4 = inlined_call_operand.vmem [shape: f32[1,32], index: 4, kind: input, shape index: {}]   ;;  %s628_s5 = inlined_call_operand.vmem [shape: f32[1,32], index: 5, kind: input, shape index: {}]   ;;  %s629_s6 = inlined_call_operand.vmem [shape: f32[1,32], index: 6, kind: input, shape index: {}]   ;;  %s630_s7 = inlined_call_operand.hbm [shape: f32[16,32], index: 7, kind: output, shape index: {}]  }
   0x1   :  { %v36_v0 = vld [vmem:[%s624_s1] sm:$0xff]  ;;  %v37_v1 = vld [vmem:[%s624_s1 + $0x8] sm:$0xff]  ;;  %v38_v2 = vld [vmem:[%s624_s1 + $0x10] sm:$0xff] }
   0x2   :  { %v393_v3 = vpack.c.bf16 %v37_v1, %v36_v0  ;;  %v39_v4 = vld [vmem:[%s624_s1 + $0x18] sm:$0xff]  ;;  %v528_v5 = vld [vmem:[%s623_s0] sm:$0xff]  ;;  %v142_v8 = vld [vmem:[%s626_s3 + $0x8] sm:$0xff] }
   0x3   :  { %v397_v6 = vpack.c.bf16 %v39_v4, %v38_v2  ;;  %355 = vmatprep.mubr.msk.f32.mxu0 %vm31_vm0, %v528_v5  ;;  %v141_v7 = vld [vmem:[%s626_s3] sm:$0xff]  ;;  %v143_v9 = vld [vmem:[%s626_s3 + $0x10] sm:$0xff]  ;;  %v144_v11 = vld [vmem:[%s626_s3 + $0x18] sm:$0xff] }
   0x4   :  { %394 = vmatprep.subr.bf16.mxu0 %v393_v3  ;;  %v401_v10 = vpack.c.bf16 %v142_v8, %v141_v7  ;;  %v405_v12 = vpack.c.bf16 %v144_v11, %v143_v9  ;;  %v145_v13 = vld [vmem:[%s626_s3 + $0x20] sm:$0xff]  ;;  %v146_v14 = vld [vmem:[%s626_s3 + $0x28] sm:$0xff] }
   0x5   :  { %396 = vmatpush3.bf16.msra.mxu0 %v393_v3 }
   0x6   :  { %12 = vsyncpa [#allocation4], 0  ;;  %398 = vmatprep.subr.bf16.mxu0 %v397_v6  ;;  %402 = vmatprep.subr.bf16.mxu1 %v401_v10  ;;  %v409_v15 = vpack.c.bf16 %v146_v14, %v145_v13  ;;  %v553_v16 = vld [vmem:[%s623_s0 + $0x8] sm:$0xff]  ;;  %v147_v17 = vld [vmem:[%s626_s3 + $0x30] sm:$0xff]  ;;  %v469_v32 = vmov 0.0   ;;  %s470_s24 = smov [#allocation3]  }
   0x7   :  { %404 = vmatpush3.bf16.msra.mxu1 %v401_v10  ;;  %v148_v18 = vld [vmem:[%s626_s3 + $0x38] sm:$0xff]  ;;  %v149_v20 = vld [vmem:[%s626_s3 + $0x40] sm:$0xff]  ;;  %v150_v21 = vld [vmem:[%s626_s3 + $0x48] sm:$0xff]  ;;  %33 = vst.msk [vmem:[#allocation2 + $0x8] sm:$0xff] %vm31_vm0, %v469_v32  ;;  %s306_s25 = sshll.u32 %s470_s24, 4  ;;  %s307_s25 = int_to_ptr.vmem [resolvable:$true] %s306_s25 }
   0x8   :  { %406 = vmatprep.subr.bf16.mxu1 %v405_v12  ;;  %v413_v19 = vpack.c.bf16 %v148_v18, %v147_v17  ;;  %v417_v22 = vpack.c.bf16 %v150_v21, %v149_v20  ;;  %v151_v23 = vld [vmem:[%s626_s3 + $0x50] sm:$0xff]  ;;  %v152_v24 = vld [vmem:[%s626_s3 + $0x58] sm:$0xff]  ;;  %v153_v26 = vld [vmem:[%s626_s3 + $0x60] sm:$0xff]  ;;  %32 = vst.msk [vmem:[#allocation2] sm:$0xff] %vm31_vm0, %v469_v32  ;;  %s445_s26 = scalar_lea.vmem %s307_s25, 256  ;;  %p450_p1 = scmp.lt.s32.totalorder %s307_s25, %s307_s25 }
   0x9   :  { %400 = vmatpush3.bf16.msra.mxu0 %v397_v6  ;;  %v421_v25 = vpack.c.bf16 %v152_v24, %v151_v23  ;;  %v154_v27 = vld [vmem:[%s626_s3 + $0x68] sm:$0xff]  ;;  %v155_v29 = vld [vmem:[%s626_s3 + $0x70] sm:$0xff]  ;;  %v156_v30 = vld [vmem:[%s626_s3 + $0x78] sm:$0xff]  ;;  %p446_p0 = scmp.ne.s32.totalorder %s307_s25, %s445_s26  ;;  %p451_p2 = scmp.lt.s32.totalorder %s445_s26, %s445_s26 }
   0xa   :  { %v425_v28 = vpack.c.bf16 %v154_v27, %v153_v26  ;;  %v429_v31 = vpack.c.bf16 %v156_v30, %v155_v29  ;;  %v317_v33 = vld [vmem:[%s625_s2] ss:$0 sm:$0xff] }
   0xb   :  { %408 = vmatpush3.bf16.msra.mxu1 %v405_v12  ;;  %v320_v54 = vld [vmem:[%s627_s4] ss:$0 sm:$0xff]  ;;  %p452_p3 = por %p451_p2, %p450_p1 }
   0xc   :  { %356 = vmatmul.mubr.msk.f32.vlgmr.msra.gmra.mrb[0].mxu0 %vm31_vm0, %v553_v16  ;;  %410 = vmatprep.subr.bf16.mxu1 %v409_v15  ;;  %v322_v18 = vld [vmem:[%s629_s6] ss:$0 sm:$0xff] }
   0xd   :  { %p453_p4 = pnand %p452_p3, %p446_p0 }
   0xe   :  { %v140_v48 = vld [vmem:[#allocation2 + $0x8] sm:$0xff] }
   0xf   :  { %412 = vmatpush3.bf16.msra.mxu1 %v409_v15  ;;  %v139_v49 = vld [vmem:[#allocation2] sm:$0xff] }
  0x10   :  { %414 = vmatprep.subr.bf16.mxu1 %v413_v19 }
  0x13   :  { %416 = vmatpush3.bf16.msra.mxu1 %v413_v19 }
  0x14   :  { %418 = vmatprep.subr.bf16.mxu1 %v417_v22 }
  0x17   :  { %420 = vmatpush3.bf16.msra.mxu1 %v417_v22 }
  0x18   :  { %422 = vmatprep.subr.bf16.mxu1 %v421_v25 }
  0x1b   :  { %424 = vmatpush3.bf16.msra.mxu1 %v421_v25 }
  0x1c   :  { %426 = vmatprep.subr.bf16.mxu1 %v425_v28 }
  0x1f   :  { %428 = vmatpush3.bf16.msra.mxu1 %v425_v28 }
  0x20   :  { %430 = vmatprep.subr.bf16.mxu1 %v429_v31 }
  0x23   :  { %432 = vmatpush3.bf16.msra.mxu1 %v429_v31 }
  0xdf   :  { %v357_v34 = vpop.f32.mrb[0].mxu0 }
  0xe0   :  { %v126_v35 = vadd.f32 %v357_v34, %v317_v33  ;;  %v120_v36 = vpop.f32.mrb[1].mxu0 }
  0xe1   :  { %v121_v37 = vadd.f32 %v317_v33, %v120_v36 }
  0xe2   :  { %v132_v38 = vmul.f32 0.70710677, %v126_v35  ;;  %v130_v45 = vmul.f32 0.5, %v126_v35 }
  0xe3   :  { %v131_v39 = vmul.f32 0.70710677, %v121_v37  ;;  %v129_v43 = vmul.f32 0.5, %v121_v37 }
  0xe4   :  { %437 = verf.f32 %v132_v38 }
  0xe5   :  { %439 = verf.f32 %v131_v39 }
  0xee   :  { %v438_v40 = vpop.eup %437 }
  0xef   :  { %v440_v41 = vpop.eup %439  ;;  %v136_v42 = vadd.f32 1.0, %v438_v40 }
  0xf0   :  { %v135_v44 = vadd.f32 1.0, %v440_v41 }
  0xf1   :  { %v138_v47 = vmul.f32 %v136_v42, %v130_v45 }
  0xf2   :  { %v137_v46 = vmul.f32 %v135_v44, %v129_v43 }
  0xf4   :  { %390 = vmatprep.mubr.f32.mxu1 %v137_v46 }
  0xf5   :  { %391 = vmatmul.mubr.f32.vlgmr.msra.gmra.mrb[0].mxu1 %v138_v47 }
 0x1c8   :  { %v392_v50 = vpop.f32.mrb[0].mxu1 }
 0x1c9   :  { %v233_v51 = vadd.f32 %v392_v50, %v140_v48  ;;  %v223_v52 = vpop.f32.mrb[1].mxu1 }
 0x1ca   :  { %v232_v53 = vadd.f32 %v223_v52, %v139_v49 }
 0x1cb   :  { %235 = vst.msk [vmem:[#allocation2 + $0x8] sm:$0xff] %vm31_vm0, %v233_v51 }
 0x1cc   :  { %234 = vst.msk [vmem:[#allocation2] sm:$0xff] %vm31_vm0, %v232_v53 }
 0x1d2   :  { %v240_v55 = vld [vmem:[#allocation2 + $0x8] sm:$0xff] }
 0x1d3   :  { %v239_v56 = vld [vmem:[#allocation2] sm:$0xff]  ;;  %v249_v58 = vadd.f32 %v320_v54, %v240_v55 }
 0x1d4   :  { %v248_v57 = vadd.f32 %v320_v54, %v239_v56 }
 0x1d5   :  { %v253_v61 = vadd.f32 %v249_v58, %v553_v16  ;;  %v321_v16 = vld [vmem:[%s628_s5] ss:$0 sm:$0xff] }
 0x1d6   :  { %v252_v59 = vadd.f32 %v248_v57, %v528_v5 }
 0x1d7   :  { %v257_v62 = vsel %vm31_vm0, %v253_v61, 0.0 }
 0x1d8   :  { %v254_v60 = vsel %vm31_vm0, %v252_v59, 0.0 }
 0x1d9   :  { %255 = vadd.xlane.f32.xlu0 %v254_v60 }
 0x1dd   :  { %258 = vadd.xlane.f32.xlu0 %v257_v62 }
 0x266   :  { %v256_v63 = vpop.xlane.xlu0 %255 }
 0x267   :  { %v261_v0 = vmul.f32 0.03125, %v256_v63 }
 0x269   :  { %v263_v1 = vsub.f32 %v252_v59, %v261_v0 }
 0x26a   :  { %v259_v2 = vpop.xlane.xlu0 %258 }
 0x26b   :  { %v262_v3 = vmul.f32 0.03125, %v259_v2  ;;  %v265_v4 = vmul.f32 %v263_v1, %v263_v1 }
 0x26d   :  { %v264_v6 = vsub.f32 %v253_v61, %v262_v3  ;;  %v267_v7 = vsel %vm31_vm0, %v265_v4, 0.0 }
 0x26e   :  { %268 = vadd.xlane.f32.xlu1 %v267_v7 }
 0x26f   :  { %v266_v8 = vmul.f32 %v264_v6, %v264_v6 }
 0x271   :  { %v270_v5 = vsel %vm31_vm0, %v266_v8, 0.0 }
 0x272   :  { %271 = vadd.xlane.f32.xlu1 %v270_v5 }
 0x2fb   :  { %v269_v9 = vpop.xlane.xlu1 %268 }
 0x2fc   :  { %v273_v10 = vmul.f32 0.03125, %v269_v9 }
 0x2fe   :  { %v275_v11 = vadd.f32 1e-12, %v273_v10 }
 0x2ff   :  { %v272_v12 = vpop.xlane.xlu1 %271 }
 0x300   :  { %441 = vrsqrt.f32 %v275_v11  ;;  %v274_v13 = vmul.f32 0.03125, %v272_v12 }
 0x302   :  { %v276_v14 = vadd.f32 1e-12, %v274_v13 }
 0x304   :  { %443 = vrsqrt.f32 %v276_v14 }
 0x30a   :  { %v442_v15 = vpop.eup %441 }
 0x30b   :  { %v279_v17 = vmul.f32 %v442_v15, %v263_v1 }
 0x30d   :  { %v288_v19 = vmul.f32 %v321_v16, %v279_v17 }
 0x30e   :  { %v444_v20 = vpop.eup %443 }
 0x30f   :  { %v280_v21 = vmul.f32 %v444_v20, %v264_v6  ;;  %v297_v22 = vadd.f32 %v322_v18, %v288_v19 }
 0x311   :  { %v289_v23 = vmul.f32 %v321_v16, %v280_v21  ;;  %299 = vst.msk [vmem:[#allocation3] sm:$0xff] %vm31_vm0, %v297_v22 }
 0x313   :  { %v298_v24 = vadd.f32 %v322_v18, %v289_v23 }
 0x315   :  { %300 = vst.msk [vmem:[#allocation3 + $0x8] sm:$0xff] %vm31_vm0, %v298_v24 }
 0x316   :  { %456 = shalt.err (!%p453_p4)
}
 0x317   :  { %s457_s27 = scalar_lea.hbm %s630_s7, 256 }
 0x318   :  { %p458_p5 = scmp.ne.s32.totalorder %s630_s7, %s457_s27  ;;  %p461_p6 = scmp.lt.u32.totalorder %s457_s27, %s630_s7 }
 0x31a   :  { %p463_p7 = pnand %p461_p6, %p458_p5 }
 0x31c   :  { %466 = shalt.err (!%p463_p7)
}
 0x31d   :  { %s471_s8 = smov 128   ;;  %s472_s9 = smov 8  }
 0x31e   :  { %312 = dma.vmem_to_hbm [thread:$0]  %s307_s25, 256, %s630_s7, [#allocation4], %s471_s8, %s471_s8, %s472_s9  }
 0x31f   :  { %467 = dma.done.wait [#allocation4], 256  }
 0x320   :  { %468 = vsyncadd [#allocation4], 4294967040 }
 0x321   :  { %316 = vsyncpa [#allocation4], 1 }

// kernel: bert_encoder.7
= control target key start
LH: loop header
LB: loop body
LE: loop exit
PB: predicated region body
PF: predicated region fallthrough
CT: control target
= control target key end

     0   :  { %s1658_s30 = smov 0   ;;  %s1660_s10 = smov 0   ;;  %s1794_s0 = inlined_call_operand.vmem [shape: f32[2,4,8,8], index: 0, kind: input, shape index: {}]   ;;  %s1795_s1 = inlined_call_operand.vmem [shape: f32[2,4,8,8], index: 1, kind: input, shape index: {}]   ;;  %s1796_s2 = inlined_call_operand.vmem [shape: f32[2,4,8,8], index: 2, kind: input, shape index: {}]   ;;  %s1797_s3 = inlined_call_operand.vmem [shape: f32[2,1,8], index: 3, kind: input, shape index: {}]   ;;  %s1798_s4 = inlined_call_operand.vmem [shape: f32[2,8,32], index: 4, kind: input, shape index: {}]   ;;  %s1799_s5 = inlined_call_operand.vmem [shape: f32[32,32], index: 5, kind: input, shape index: {}]   ;;  %s1800_s6 = inlined_call_operand.vmem [shape: f32[1,32], index: 6, kind: input, shape index: {}]   ;;  %s1801_s7 = inlined_call_operand.vmem [shape: f32[1,32], index: 7, kind: input, shape index: {}]   ;;  %s1802_s8 = inlined_call_operand.vmem [shape: f32[1,32], index: 8, kind: input, shape index: {}]   ;;  %s1803_s9 = inlined_call_operand.vmem [shape: f32[2,8,32], index: 9, kind: output, shape index: {}]  }
   0x1   :  { %s1662_s11 = smov 0  }
   0x2 LB: > { %s31_s12 = sadd.s32 1, %s1596_s10  ;;  %p1412_p0 = scmp.ge.s32.totalorder %s1600_s11, 1  ;;  %s1600_s11 = sphi %s1662_s11, %s19_s11   ;;  %s1596_s10 = sphi %s1660_s10, %s1805_s10   ;;  %s1592_s30 = sphi %s1658_s30, %s1804_s30  }
   0x3   : > { %p33_p1 = scmp.ge.s32.totalorder %s31_s12, 2  ;;  %p357_p2 = scmp.lt.s32.totalorder %s1600_s11, 3 }
   0x5   : > { %s1807_s12 = smov (%p33_p1, %s31_s12), 0  ;;  %p358_p3 = pnand %p1412_p0, %p357_p2 }
   0x6   : > { %p422_p4 = scmp.lt.s32.totalorder (!%p358_p3), %s1592_s30, 1  ;;  %v1602_v0 = vmov (!%p358_p3), 0.0   ;;  %vm1603_vm0 = vmmov (!%p358_p3), 0   ;;  %vm479_vm1 = vcmask (!%p358_p3), 64512   ;;  %v1158_v55 = vld [vmem:[%s1799_s5] sm:$0xff] (!%p358_p3)  ;;  %v1159_v56 = vld [vmem:[%s1799_s5 + $0x8] sm:$0xff] (!%p358_p3) }
   0x7   : > { %361 = sbr.rel (%p358_p3) target bundleno = 1276 (0x4fc), region = 56  ;;  %1473 = vmatprep.subr.mxu0 (!%p358_p3), %v1602_v0  ;;  %1483 = vmatprep.subr.mxu1 (!%p358_p3), %v1602_v0  ;;  %v1525_v57 = vpack.c.bf16 (!%p358_p3), %v1159_v56, %v1158_v55  ;;  %v1604_v59 = vmov (!%p358_p3), 0.0|0.0   ;;  %v1160_v60 = vld [vmem:[%s1799_s5 + $0x10] sm:$0xff] (!%p358_p3)  ;;  %v1161_v61 = vld [vmem:[%s1799_s5 + $0x18] sm:$0xff] (!%p358_p3)  ;;  %vm466_vm2 = vcmask (!%p358_p3), 261120   ;;  %s1605_s17 = smov (!%p358_p3), 8  }
   0x8   : > { %1475 = vmatprep.mubr.msk.f32.mxu0 (!%p358_p3), %vm1603_vm0, %v1602_v0  ;;  %1485 = vmatprep.mubr.msk.f32.mxu1 (!%p358_p3), %vm1603_vm0, %v1602_v0  ;;  %v1528_v62 = vpack.c.bf16 (!%p358_p3), %v1161_v61, %v1160_v60  ;;  %467 = vst.msk [vmem:[#allocation2] sm:$0xff] (!%p358_p3), %vm466_vm2, %v1602_v0  ;;  %s1606_s18 = smov (!%p358_p3), 16   ;;  %vm1154_vm3 = vcmask (!%p358_p3), 130048   ;;  %vm1156_vm4 = vcmask (!%p358_p3), 195584  }
   0xe   : > { %s1809_s30 = smov (!%p422_p4, %s1592_s30), 1 }
   0xf   : > { %s1685_s13 = sshll.u32 %s1809_s30, 5  ;;  %s453_s22 = scalar_lea.vmem %s1797_s3, %s1809_s30 }
  0x10   : > { %s429_s16 = scalar_lea.vmem %s1794_s0, %s1685_s13  ;;  %s439_s19 = scalar_lea.vmem %s1795_s1, %s1685_s13  ;;  %v1421_v13 = vld [vmem:[%s453_s22] ss:$0 sm:$0xff] }
  0x11   : > { %v471_v1 = vld [vmem:[%s439_s19] sm:$0xff]  ;;  %v1426_v2 = vld [vmem:[%s439_s19 + $0x8] sm:$0xff]  ;;  %v1431_v6 = vld [vmem:[%s429_s16 + $0x10] sm:$0xff]  ;;  %s1726_s25 = scalar_lea.vmem %s1796_s2, %s1685_s13  ;;  %s1419_s20 = sshll.u32 %s1809_s30, 3 }
  0x12   : > { %v469_v3 = vld [vmem:[%s429_s16] sm:$0xff]  ;;  %1474 = vmatpush3.xpose.msk.msra.mxu0 %vm479_vm1, %v471_v1  ;;  %1484 = vmatpush3.xpose.msk.msra.mxu1 %vm479_vm1, %v1426_v2  ;;  %v1425_v5 = vld [vmem:[%s429_s16 + $0x8] sm:$0xff]  ;;  %v1432_v8 = vld [vmem:[%s439_s19 + $0x10] sm:$0xff]  ;;  %v809_v9 = vmul.f32 0.35355338, %v1431_v6  ;;  %s457_s23 = scalar_lea.vmem %s1798_s4, %s1419_s20  ;;  %s461_s14 = scalar_lea.vmem %s1803_s9, %s1419_s20 }
  0x13   : > { %v470_v4 = vmul.f32 0.35355338, %v469_v3  ;;  %v642_v7 = vmul.f32 0.35355338, %v1425_v5  ;;  %1493 = vmatprep.subr.mxu1 %v1602_v0  ;;  %1478 = vmatprep.subr.mxu0 %v1602_v0  ;;  %v1437_v10 = vld [vmem:[%s429_s16 + $0x18] sm:$0xff]  ;;  %v472_v30 = vld [vmem:[%s1726_s25] sm:$0xff] }
  0x14   : > { %v1438_v11 = vld [vmem:[%s439_s19 + $0x18] sm:$0xff]  ;;  %v976_v12 = vmul.f32 0.35355338, %v1437_v10  ;;  %v1427_v43 = vld [vmem:[%s1726_s25 + $0x8] sm:$0xff]  ;;  %v1433_v46 = vld [vmem:[%s1726_s25 + $0x10] sm:$0xff]  ;;  %s1607_s19 = smov 24  }
  0x15   : > { %1476 = vmatmul.mubr.msk.f32.vlgmr.msra.gmra.mrb[0].mxu0 %vm479_vm1, %v470_v4  ;;  %1486 = vmatmul.mubr.msk.f32.vlgmr.msra.gmra.mrb[0].mxu1 %vm479_vm1, %v642_v7  ;;  %v1439_v51 = vld [vmem:[%s1726_s25 + $0x18] sm:$0xff] }
  0x16   : > { %1494 = vmatpush3.xpose.msk.msra.mxu1 %vm479_vm1, %v1432_v8  ;;  %1495 = vmatprep.mubr.msk.f32.mxu1 %vm1603_vm0, %v1602_v0 }
  0x17   : > { %1503 = vmatprep.subr.mxu1 %v1602_v0  ;;  %1480 = vmatprep.mubr.msk.f32.mxu0 %vm1603_vm0, %v1602_v0 }
  0x18   : > { %1479 = vmatpush3.msra.mxu0 %v472_v30 }
  0x19   : > { %1496 = vmatmul.mubr.msk.f32.vlgmr.msra.gmra.mrb[2].mxu1 %vm479_vm1, %v809_v9  ;;  %1488 = vmatprep.subr.mxu0 %v1602_v0 }
  0x1a   : > { %1504 = vmatpush3.xpose.msk.msra.mxu1 %vm479_vm1, %v1438_v11  ;;  %1505 = vmatprep.mubr.msk.f32.mxu1 %vm1603_vm0, %v1602_v0 }
  0x1b   : > { %1524 = vmatprep.subr.bf16.mxu1 %v1604_v59 }
  0x1d   : > { %1506 = vmatmul.mubr.msk.f32.vlgmr.msra.gmra.mrb[4].mxu1 %vm479_vm1, %v976_v12 }
  0x1e   : > { %1521 = vmatprep.mubr.msk.f32.mxu1 %vm1603_vm0, %v1602_v0  ;;  %1526 = vmatpush3.bf16.msra.mxu1 %v1525_v57 }
  0x1f   : > { %1527 = vmatprep.subr.bf16.mxu1 %v1604_v59 }
  0x22   : > { %1529 = vmatpush3.bf16.msra.mxu1 %v1528_v62 }
  0xe8   : > { %v552_v14 = vpop.f32.mrb[0].mxu0  ;;  %v719_v15 = vpop.f32.mrb[0].mxu1 }
  0xe9   : > { %v553_v16 = vadd.f32 %v1421_v13, %v552_v14  ;;  %v1477_v17 = vpop.f32.mrb[1].mxu0  ;;  %v720_v18 = vadd.f32 %v1421_v13, %v719_v15  ;;  %v1487_v19 = vpop.f32.mrb[1].mxu1 }
  0xeb   : > { %v556_v20 = vsel %vm479_vm1, %v553_v16, -inf  ;;  %v723_v24 = vsel %vm479_vm1, %v720_v18, -inf }
  0xec   : > { %v886_v21 = vpop.f32.mrb[2].mxu1  ;;  %557 = vmax.xlane.f32.xlu0 %v556_v20 }
  0xed   : > { %v887_v22 = vadd.f32 %v1421_v13, %v886_v21  ;;  %v1497_v23 = vpop.f32.mrb[3].mxu1 }
  0xee   : > { %v1162_v23 = vld [vmem:[#allocation2] sm:$0xff] }
  0xef   : > { %v890_v25 = vsel %vm479_vm1, %v887_v22, -inf }
  0xf0   : > { %891 = vmax.xlane.f32.xlu1 %v890_v25  ;;  %v1053_v26 = vpop.f32.mrb[4].mxu1  ;;  %724 = vmax.xlane.f32.xlu0 %v723_v24 }
  0xf1   : > { %v1054_v27 = vadd.f32 %v1421_v13, %v1053_v26  ;;  %v1507_v28 = vpop.f32.mrb[5].mxu1 }
  0xf3   : > { %v1057_v29 = vsel %vm479_vm1, %v1054_v27, -inf }
  0xf4   : > { %1058 = vmax.xlane.f32.xlu1 %v1057_v29  ;;  %v1251_v29 = vld [vmem:[%s457_s23] sm:$0xff] }
 0x179   : > { %v558_v31 = vpop.xlane.xlu0 %557 }
 0x17a   : > { %v559_v32 = vsub.f32 %v553_v16, %v558_v31 }
 0x17c   : > { %v560_v33 = vmul.f32 1.442695, %v559_v32 }
 0x17d   : > { %v892_v34 = vpop.xlane.xlu1 %891  ;;  %v725_v35 = vpop.xlane.xlu0 %724 }
 0x17e   : > { %1560 = vpow2.f32 %v560_v33  ;;  %v893_v36 = vsub.f32 %v887_v22, %v892_v34  ;;  %v726_v37 = vsub.f32 %v720_v18, %v725_v35 }
 0x180   : > { %v894_v38 = vmul.f32 1.442695, %v893_v36  ;;  %v727_v39 = vmul.f32 1.442695, %v726_v37 }
 0x181   : > { %v1059_v40 = vpop.xlane.xlu1 %1058 }
 0x182   : > { %1562 = vpow2.f32 %v894_v38  ;;  %v1060_v41 = vsub.f32 %v1054_v27, %v1059_v40  ;;  %v1444_v27 = vld [vmem:[%s1800_s6] ss:$0 sm:$0xff] }
 0x183   : > { %1564 = vpow2.f32 %v727_v39 }
 0x184   : > { %v1061_v42 = vmul.f32 1.442695, %v1060_v41 }
 0x186   : > { %1566 = vpow2.f32 %v1061_v42  ;;  %v1445_v42 = vld [vmem:[%s1801_s7] ss:$0 sm:$0xff] }
 0x188   : > { %v1561_v44 = vpop.eup %1560 }
 0x189   : > { %1481 = vmatmul.mubr.msk.f32.vlgmr.msra.gmra.mrb[2].mxu0 %vm479_vm1, %v1561_v44  ;;  %v562_v52 = vsel %vm479_vm1, %v1561_v44, 0.0  ;;  %v1446_v44 = vld [vmem:[%s1802_s8] ss:$0 sm:$0xff] }
 0x18a   : > { %1489 = vmatpush3.msra.mxu0 %v1427_v43  ;;  %1490 = vmatprep.mubr.msk.f32.mxu0 %vm1603_vm0, %v1602_v0 }
 0x18b   : > { %1498 = vmatprep.subr.mxu0 %v1602_v0 }
 0x18c   : > { %v1563_v45 = vpop.eup %1562 }
 0x18d   : > { %v1565_v47 = vpop.eup %1564  ;;  %v896_v48 = vsel %vm479_vm1, %v1563_v45, 0.0 }
 0x18e   : > { %1491 = vmatmul.mubr.msk.f32.vlgmr.msra.gmra.mrb[4].mxu0 %vm479_vm1, %v1565_v47  ;;  %897 = vadd.xlane.f32.xlu1 %v896_v48  ;;  %v729_v49 = vsel %vm479_vm1, %v1565_v47, 0.0 }
 0x18f   : > { %1499 = vmatpush3.msra.mxu0 %v1433_v46  ;;  %730 = vadd.xlane.f32.xlu0 %v729_v49 }
 0x190   : > { %v1567_v50 = vpop.eup %1566  ;;  %1500 = vmatprep.mubr.msk.f32.mxu0 %vm1603_vm0, %v1602_v0  ;;  %1508 = vmatprep.subr.mxu0 %v1602_v0 }
 0x191   : > { %v1063_v53 = vsel %vm479_vm1, %v1567_v50, 0.0 }
 0x192   : > { %1501 = vmatmul.mubr.msk.f32.vlgmr.msra.gmra.mrb[6].mxu0 %vm479_vm1, %v1563_v45  ;;  %563 = vadd.xlane.f32.xlu1 %v562_v52 }
 0x193   : > { %1509 = vmatpush3.msra.mxu0 %v1439_v51  ;;  %1064 = vadd.xlane.f32.xlu0 %v1063_v53 }
 0x194   : > { %1510 = vmatprep.mubr.msk.f32.mxu0 %vm1603_vm0, %v1602_v0 }
 0x196   : > { %1511 = vmatmul.mubr.msk.f32.vlgmr.msra.gmra.mrb[8].mxu0 %vm479_vm1, %v1567_v50 }
 0x21b   : > { %v898_v58 = vpop.xlane.xlu1 %897 }
 0x21c   : > { %v731_v54 = vpop.xlane.xlu0 %730 }
 0x21d   : > { %1568 = vrcp.f32 %v731_v54 }
 0x21e   : > { %1570 = vrcp.f32 %v898_v58 }
 0x21f   : > { %v564_v15 = vpop.xlane.xlu1 %563 }
 0x220   : > { %v1065_v63 = vpop.xlane.xlu0 %1064 }
 0x221   : > { %1572 = vrcp.f32 %v1065_v63 }
 0x222   : > { %1574 = vrcp.f32 %v564_v15 }
 0x227   : > { %v1569_v3 = vpop.eup %1568 }
 0x228   : > { %v1571_v7 = vpop.eup %1570 }
 0x22b   : > { %v1573_v11 = vpop.eup %1572 }
 0x22c   : > { %v1575_v0 = vpop.eup %1574 }
 0x25c   : > { %v634_v1 = vpop.f32.mrb[2].mxu0 }
 0x25d   : > { %v1482_v2 = vpop.f32.mrb[3].mxu0  ;;  %v639_v18 = vmul.f32 %v1575_v0, %v634_v1 }
 0x261   : > { %v801_v4 = vpop.f32.mrb[4].mxu0 }
 0x262   : > { %v806_v5 = vmul.f32 %v1569_v3, %v801_v4  ;;  %v1492_v6 = vpop.f32.mrb[5].mxu0 }
 0x264   : > { %1142 = vrot.lane.b32.xlu0 %v806_v5, %s1605_s17 }
 0x265   : > { %v968_v8 = vpop.f32.mrb[6].mxu0 }
 0x266   : > { %v973_v9 = vmul.f32 %v1571_v7, %v968_v8  ;;  %v1502_v10 = vpop.f32.mrb[7].mxu0 }
 0x268   : > { %1146 = vrot.lane.b32.xlu1 %v973_v9, %s1606_s18 }
 0x269   : > { %v1135_v12 = vpop.f32.mrb[8].mxu0 }
 0x26a   : > { %v1140_v13 = vmul.f32 %v1573_v11, %v1135_v12  ;;  %v1512_v14 = vpop.f32.mrb[9].mxu0 }
 0x26c   : > { %1150 = vrot.lane.b32.xlu1 %v1140_v13, %s1607_s19 }
 0x2d6   : > { %v1143_v16 = vpop.permute.xlu0 %1142 }
 0x2d7   : > { %v1153_v19 = vsel %vm479_vm1, %v639_v18, %v1143_v16 }
 0x2da   : > { %v1147_v17 = vpop.permute.xlu1 %1146 }
 0x2db   : > { %v1155_v20 = vsel %vm1154_vm3, %v1153_v19, %v1147_v17 }
 0x2de   : > { %v1151_v21 = vpop.permute.xlu1 %1150 }
 0x2df   : > { %v1157_v22 = vsel %vm1156_vm4, %v1155_v20, %v1151_v21 }
 0x2e0   : > { %1522 = vmatmul.mubr.msk.f32.vlgmr.msra.gmra.mrb[6].mxu1 %vm466_vm2, %v1157_v22 }
 0x3b3   : > { %v1233_v24 = vpop.f32.mrb[6].mxu1 }
 0x3b4   : > { %v1237_v25 = vadd.f32 %v1233_v24, %v1162_v23  ;;  %v1523_v26 = vpop.f32.mrb[7].mxu1 }
 0x3b6   : > { %1238 = vst.msk [vmem:[#allocation2] sm:$0xff] %vm466_vm2, %v1237_v25 }
 0x3bd   : > { %v1242_v28 = vld [vmem:[#allocation2] sm:$0xff] }
 0x3be   : > { %v1250_v30 = vadd.f32 %v1444_v27, %v1242_v28 }
 0x3c0   : > { %v1252_v31 = vadd.f32 %v1251_v29, %v1250_v30 }
 0x3c2   : > { %v1253_v32 = vsel %vm466_vm2, %v1252_v31, 0.0 }
 0x3c3   : > { %1254 = vadd.xlane.f32.xlu1 %v1253_v32 }
 0x450   : > { %v1255_v33 = vpop.xlane.xlu1 %1254 }
 0x451   : > { %v1257_v34 = vmul.f32 0.03125, %v1255_v33 }
 0x453   : > { %v1258_v35 = vsub.f32 %v1252_v31, %v1257_v34 }
 0x455   : > { %v1259_v36 = vmul.f32 %v1258_v35, %v1258_v35 }
 0x457   : > { %v1260_v37 = vsel %vm466_vm2, %v1259_v36, 0.0 }
 0x458   : > { %1261 = vadd.xlane.f32.xlu0 %v1260_v37 }
 0x4e5   : > { %v1262_v38 = vpop.xlane.xlu0 %1261 }
 0x4e6   : > { %v1263_v39 = vmul.f32 0.03125, %v1262_v38 }
 0x4e8   : > { %v1264_v40 = vadd.f32 1e-12, %v1263_v39 }
 0x4ea   : > { %1576 = vrsqrt.f32 %v1264_v40 }
 0x4f4   : > { %v1577_v41 = vpop.eup %1576 }
 0x4f5   : > { %v1266_v43 = vmul.f32 %v1577_v41, %v1258_v35 }
 0x4f7   : > { %v1274_v45 = vmul.f32 %v1445_v42, %v1266_v43 }
 0x4f9   : > { %v1282_v46 = vadd.f32 %v1446_v44, %v1274_v45 }
 0x4fb   : > { %1283 = vst.msk [vmem:[%s461_s14] sm:$0xff] %vm466_vm2, %v1282_v46 }
 0x4fc PF: > { %s19_s11 = sadd.s32 1, %s1600_s11   ;;  %s1804_s30 = smov %s1596_s10 }
 0x4fd   : > { %p16_p5 = scmp.ge.s32.totalorder %s19_s11, 4   ;;  %s1805_s10 = smov %s1807_s12 }
 0x4ff   :  { %18 = sbr.rel (!%p16_p5) target bundleno = 2 (0x2), region = 115 }

</bundles_post_ra>
